<compile_context>
chip_gen: v7x
topology: tpu7x:2x2x1
jax: 0.10.0
libtpu: 0.0.40
codegen_flags: <defaults>
</compile_context>

<pallas_src>
import jax
import jax.numpy as jnp
from jax.experimental import pallas as pl
from jax.experimental.pallas import tpu as pltpu

LIN_TK = 1024  # K tile for the fused linear1+linear2 kernel


def _round_up(x, m):
    return (x + m - 1) // m * m


# ---------------------------------------------------------------------------
# Kernels
# ---------------------------------------------------------------------------

def _mm_bias_relu_kernel(a_ref, b_ref, bias_ref, o_ref):
    """One (TM, Np) output tile of relu(a @ b + bias). a/b are bf16, acc f32."""
    acc = jnp.dot(a_ref[...], b_ref[...], preferred_element_type=jnp.float32)
    acc = jnp.maximum(acc + bias_ref[...], 0.0)
    o_ref[...] = acc.astype(o_ref.dtype)


def _fused_linear_kernel(a_ref, w3_ref, b3_ref, w4_ref, b4_ref, o_ref, acc_ref):
    """K-tiled: logits = relu(a @ w3 + b3) @ w4 + b4, hidden kept in VMEM."""
    k = pl.program_id(0)

    @pl.when(k == 0)
    def _():
        acc_ref[...] = jnp.zeros_like(acc_ref)

    acc_ref[...] += jnp.dot(a_ref[...], w3_ref[...],
                            preferred_element_type=jnp.float32)

    @pl.when(k == pl.num_programs(0) - 1)
    def _():
        h = jnp.maximum(acc_ref[...] + b3_ref[...], 0.0)          # (Mp, 128) f32
        logits = jnp.dot(h.astype(jnp.bfloat16), w4_ref[...],
                         preferred_element_type=jnp.float32)      # (Mp, 128)
        o_ref[...] = logits + b4_ref[...]


# ---------------------------------------------------------------------------
# Pallas wrappers
# ---------------------------------------------------------------------------

def conv_gemm(a, w_p, bias_p, cout):
    """relu(a @ w_p + bias_p) with a unpadded bf16 (M,K); weights pre-padded.

    w_p: (Kp, Np) bf16, bias_p: (1, Np) f32.  Returns (M, cout) bf16.
    """
    M, K = a.shape
    Kp, Np = w_p.shape
    TM = 128 if M >= 128 else _round_up(M, 16)
    Mp = _round_up(M, TM)
    a_p = jnp.pad(a, ((0, Mp - M), (0, Kp - K)))

    out = pl.pallas_call(
        _mm_bias_relu_kernel,
        out_shape=jax.ShapeDtypeStruct((Mp, Np), jnp.bfloat16),
        grid_spec=pltpu.PrefetchScalarGridSpec(
            num_scalar_prefetch=0,
            grid=(Mp // TM,),
            in_specs=[
                pl.BlockSpec((TM, Kp), lambda i: (i, 0)),   # activation tile
                pl.BlockSpec((Kp, Np), lambda i: (0, 0)),   # resident weight
                pl.BlockSpec((1, Np), lambda i: (0, 0)),    # bias row
            ],
            out_specs=pl.BlockSpec((TM, Np), lambda i: (i, 0)),
        ),
        compiler_params=pltpu.CompilerParams(
            dimension_semantics=("parallel",)),
    )(a_p, w_p, bias_p)

    return out[:M, :cout]


def fused_linears(a, w3_p, b3_p, w4_p, b4_p, n_out):
    """logits = relu(a @ w3 + b3) @ w4 + b4 as a single K-tiled pallas_call."""
    M, K = a.shape
    Kp, H = w3_p.shape          # H = 128 (hidden)
    _, Np = w4_p.shape          # Np = 128 (padded output lanes)
    Mp = _round_up(M, 16)
    a_p = jnp.pad(a, ((0, Mp - M), (0, Kp - K)))
    nk = Kp // LIN_TK

    out = pl.pallas_call(
        _fused_linear_kernel,
        out_shape=jax.ShapeDtypeStruct((Mp, Np), jnp.float32),
        grid_spec=pltpu.PrefetchScalarGridSpec(
            num_scalar_prefetch=0,
            grid=(nk,),
            in_specs=[
                pl.BlockSpec((Mp, LIN_TK), lambda k: (0, k)),   # activation K-slab
                pl.BlockSpec((LIN_TK, H), lambda k: (k, 0)),    # w3 K-slab
                pl.BlockSpec((1, H), lambda k: (0, 0)),         # b3
                pl.BlockSpec((H, Np), lambda k: (0, 0)),        # w4 (resident)
                pl.BlockSpec((1, Np), lambda k: (0, 0)),        # b4
            ],
            out_specs=pl.BlockSpec((Mp, Np), lambda k: (0, 0)),
            scratch_shapes=[pltpu.VMEM((Mp, H), jnp.float32)],   # hidden accumulator
        ),
        compiler_params=pltpu.CompilerParams(
            dimension_semantics=("arbitrary",)),                 # K is a reduction
    )(a_p, w3_p, b3_p, w4_p, b4_p)

    return out[:M, :n_out]


# ---------------------------------------------------------------------------
# Plain-JAX glue (im2col in NHWC)
# ---------------------------------------------------------------------------

def _im2col_nhwc(x, kh, kw, stride):
    """x: (N, H, W, C) -> patches (N*Ho*Wo, kh*kw*C), K-order = (kh, kw, C)."""
    # TODO(synk): fuse im2col into the conv kernel (implicit GEMM) for large batch.
    N, H, W, C = x.shape
    Ho = (H - kh) // stride + 1
    Wo = (W - kw) // stride + 1
    cols = []
    for ki in range(kh):
        for kj in range(kw):
            cols.append(
                x[:, ki:ki + stride * Ho:stride, kj:kj + stride * Wo:stride, :])
    p = jnp.stack(cols, axis=3)                     # (N, Ho, Wo, kh*kw, C)
    return p.reshape(N * Ho * Wo, kh * kw * C), Ho, Wo


# ---------------------------------------------------------------------------
# One-time parameter preparation (hoisted out of the per-call path)
# ---------------------------------------------------------------------------

def prepare_params(params):
    def conv_wmat(w):
        cout, cin, kh, kw = w.shape
        # (Cout, Cin, kh, kw) -> (kh, kw, Cin, Cout) -> (K, Cout), K=(kh,kw,C)
        m = w.transpose(2, 3, 1, 0).reshape(kh * kw * cin, cout)
        Kp = _round_up(m.shape[0], 128)
        Np = _round_up(cout, 128)
        return jnp.pad(m, ((0, Kp - m.shape[0]), (0, Np - cout))).astype(jnp.bfloat16)

    def pad_bias(b, n):
        return jnp.pad(b.astype(jnp.float32), (0, n - b.shape[0])).reshape(1, n)

    # linear1: permute rows from PyTorch's (C,H,W) flatten to our NHWC flatten.
    w3 = params["w3"]                                   # (128, 64*13*13)
    w3n = (w3.reshape(128, 64, 13, 13)
              .transpose(0, 2, 3, 1)
              .reshape(128, 13 * 13 * 64)
              .T)                                       # (10816, 128)
    Kp3 = _round_up(w3n.shape[0], LIN_TK)
    w3m = jnp.pad(w3n, ((0, Kp3 - w3n.shape[0]), (0, 0))).astype(jnp.bfloat16)

    # linear2: (10, 128) -> (128, 10) -> pad N to 128 lanes.
    w4m = jnp.pad(params["w4"].T, ((0, 0), (0, 128 - 10))).astype(jnp.bfloat16)

    return {
        "w1m": conv_wmat(params["w1"]), "b1p": pad_bias(params["b1"], 128),
        "w2m": conv_wmat(params["w2"]), "b2p": pad_bias(params["b2"], 128),
        "w3m": w3m, "b3p": params["b3"].astype(jnp.float32).reshape(1, 128),
        "w4m": w4m, "b4p": pad_bias(params["b4"], 128),
    }


# ---------------------------------------------------------------------------
# Forward pass
# ---------------------------------------------------------------------------

def ctiny_forward(pp, x):
    """x: (N, 3, 32, 32) NCHW f32 -> logits (N, 10) f32."""
    N = x.shape[0]
    x = jnp.transpose(x, (0, 2, 3, 1)).astype(jnp.bfloat16)     # NHWC once

    # conv1: 3 -> 32, k=3, s=1 => (N, 30, 30, 32), ReLU
    p1, Ho1, Wo1 = _im2col_nhwc(x, 3, 3, 1)                     # (N*900, 27)
    h1 = conv_gemm(p1, pp["w1m"], pp["b1p"], cout=32)
    h1 = h1.reshape(N, Ho1, Wo1, 32)

    # conv2: 32 -> 64, k=5, s=2 => (N, 13, 13, 64), ReLU
    p2, Ho2, Wo2 = _im2col_nhwc(h1, 5, 5, 2)                    # (N*169, 800)
    h2 = conv_gemm(p2, pp["w2m"], pp["b2p"], cout=64)
    h2 = h2.reshape(N, Ho2 * Wo2 * 64)                          # NHWC flatten

    # linear1 (ReLU) + linear2 fused; w3 rows were permuted to match NHWC.
    return fused_linears(h2, pp["w3m"], pp["b3p"], pp["w4m"], pp["b4p"], n_out=10)


# ---------------------------------------------------------------------------
# PyTorch-style deterministic init
# ---------------------------------------------------------------------------

def init_params(key):
    ks = jax.random.split(key, 8)

    def u(k, shape, fan_in):
        bound = 1.0 / (fan_in ** 0.5)
        return jax.random.uniform(k, shape, jnp.float32, -bound, bound)

    return {
        "w1": u(ks[0], (32, 3, 3, 3), 3 * 3 * 3),
        "b1": u(ks[1], (32,), 3 * 3 * 3),
        "w2": u(ks[2], (64, 32, 5, 5), 32 * 5 * 5),
        "b2": u(ks[3], (64,), 32 * 5 * 5),
        "w3": u(ks[4], (128, 169 * 64), 169 * 64),
        "b3": u(ks[5], (128,), 169 * 64),
        "w4": u(ks[6], (10, 128), 128),
        "b4": u(ks[7], (10,), 128),
    }


if __name__ == "__main__":
    key = jax.random.PRNGKey(0)
    k_param, k_x = jax.random.split(key)

    params = init_params(k_param)
    prepped = prepare_params(params)      # one-time weight prep (outside jit)

    # CIFAR-sized input: the 169*64 linear1 input dim pins spatial size to 32.
    x = jax.random.normal(k_x, (2, 3, 32, 32), dtype=jnp.float32)

    fwd = jax.jit(ctiny_forward)
    out = jax.block_until_ready(fwd(prepped, x))

    assert out.shape == (2, 10), out.shape
    assert out.dtype == jnp.float32
    assert bool(jnp.all(jnp.isfinite(out)))
    print("KERNEL_OK")
</pallas_src>

<mosaic_0001>
module attributes {stable_mosaic.version = 11 : i64} {
  func.func @_mm_bias_relu_kernel(%arg0: i32, %arg1: memref<128x128xbf16, #tpu.memory_space<vmem>>, %arg2: memref<128x128xbf16, #tpu.memory_space<vmem>>, %arg3: memref<1x128xf32, #tpu.memory_space<vmem>>, %arg4: memref<128x128xbf16, #tpu.memory_space<vmem>>) attributes {dimension_semantics = [#tpu.dimension_semantics<parallel>], iteration_bounds = array<i64: 15>, scalar_prefetch = 0 : i64, scratch_operands = 0 : i64, tpu.core_type = #tpu.core_type<tc>, window_params = [{transform_indices = @transform_0, window_bounds = array<i64: 128, 128>}, {pipeline_mode = #tpu.pipeline_mode<synchronous>, transform_indices = @transform_1, window_bounds = array<i64: 128, 128>}, {pipeline_mode = #tpu.pipeline_mode<synchronous>, transform_indices = @transform_2, window_bounds = array<i64: 1, 128>}, {transform_indices = @transform_3, window_bounds = array<i64: 128, 128>}]} {
    %c0 = arith.constant 0 : index
    %c0_0 = arith.constant 0 : index
    %0 = vector.load %arg1[%c0, %c0_0] : memref<128x128xbf16, #tpu.memory_space<vmem>>, vector<128x128xbf16>
    %c0_1 = arith.constant 0 : index
    %c0_2 = arith.constant 0 : index
    %1 = vector.load %arg2[%c0_1, %c0_2] : memref<128x128xbf16, #tpu.memory_space<vmem>>, vector<128x128xbf16>
    %cst = arith.constant dense<0.000000e+00> : vector<128x128xf32>
    %2 = tpu.matmul %0, %1, %cst {dimension_numbers = #tpu.dot_dimension_numbers<[1], [0], [0], [1], [0, 0, 1, 1], [], []>} : vector<128x128xbf16>, vector<128x128xbf16>, vector<128x128xf32> -> vector<128x128xf32>
    %c0_3 = arith.constant 0 : index
    %c0_4 = arith.constant 0 : index
    %3 = vector.load %arg3[%c0_3, %c0_4] : memref<1x128xf32, #tpu.memory_space<vmem>>, vector<1x128xf32>
    %4 = vector.broadcast %3 : vector<1x128xf32> to vector<128x128xf32>
    %5 = arith.addf %2, %4 : vector<128x128xf32>
    %cst_5 = arith.constant 0.000000e+00 : f32
    %6 = vector.broadcast %cst_5 : f32 to vector<128x128xf32>
    %7 = arith.maximumf %5, %6 : vector<128x128xf32>
    %8 = arith.truncf %7 : vector<128x128xf32> to vector<128x128xbf16>
    %c0_6 = arith.constant 0 : index
    %c0_7 = arith.constant 0 : index
    %9 = vector.load %arg4[%c0_6, %c0_7] : memref<128x128xbf16, #tpu.memory_space<vmem>>, vector<128x128xbf16>
    tpu.vector_store %arg4[%c0_6, %c0_7], %8 {strides = array<i32>} : memref<128x128xbf16, #tpu.memory_space<vmem>>, vector<128x128xbf16>,
    return
  }
  func.func @transform_0(%arg0: i32) -> (i32, i32) {
    %c0_i32 = arith.constant 0 : i32
    %c0_i32_0 = arith.constant 0 : i32
    return %arg0, %c0_i32 : i32, i32
  }
  func.func @transform_1(%arg0: i32) -> (i32, i32) {
    %c0_i32 = arith.constant 0 : i32
    %c0_i32_0 = arith.constant 0 : i32
    %c0_i32_1 = arith.constant 0 : i32
    return %c0_i32, %c0_i32_0 : i32, i32
  }
  func.func @transform_2(%arg0: i32) -> (i32, i32) {
    %c0_i32 = arith.constant 0 : i32
    %c0_i32_0 = arith.constant 0 : i32
    %c0_i32_1 = arith.constant 0 : i32
    return %c0_i32, %c0_i32_0 : i32, i32
  }
  func.func @transform_3(%arg0: i32) -> (i32, i32) {
    %c0_i32 = arith.constant 0 : i32
    %c0_i32_0 = arith.constant 0 : i32
    return %arg0, %c0_i32 : i32, i32
  }
}

module attributes {stable_mosaic.version = 11 : i64} {
  func.func @_mm_bias_relu_kernel(%arg0: i32, %arg1: memref<128x896xbf16, #tpu.memory_space<vmem>>, %arg2: memref<896x128xbf16, #tpu.memory_space<vmem>>, %arg3: memref<1x128xf32, #tpu.memory_space<vmem>>, %arg4: memref<128x128xbf16, #tpu.memory_space<vmem>>) attributes {dimension_semantics = [#tpu.dimension_semantics<parallel>], iteration_bounds = array<i64: 3>, scalar_prefetch = 0 : i64, scratch_operands = 0 : i64, tpu.core_type = #tpu.core_type<tc>, window_params = [{transform_indices = @transform_0, window_bounds = array<i64: 128, 896>}, {pipeline_mode = #tpu.pipeline_mode<synchronous>, transform_indices = @transform_1, window_bounds = array<i64: 896, 128>}, {pipeline_mode = #tpu.pipeline_mode<synchronous>, transform_indices = @transform_2, window_bounds = array<i64: 1, 128>}, {transform_indices = @transform_3, window_bounds = array<i64: 128, 128>}]} {
    %c0 = arith.constant 0 : index
    %c0_0 = arith.constant 0 : index
    %0 = vector.load %arg1[%c0, %c0_0] : memref<128x896xbf16, #tpu.memory_space<vmem>>, vector<128x896xbf16>
    %c0_1 = arith.constant 0 : index
    %c0_2 = arith.constant 0 : index
    %1 = vector.load %arg2[%c0_1, %c0_2] : memref<896x128xbf16, #tpu.memory_space<vmem>>, vector<896x128xbf16>
    %cst = arith.constant dense<0.000000e+00> : vector<128x128xf32>
    %2 = tpu.matmul %0, %1, %cst {dimension_numbers = #tpu.dot_dimension_numbers<[1], [0], [0], [1], [0, 0, 1, 1], [], []>} : vector<128x896xbf16>, vector<896x128xbf16>, vector<128x128xf32> -> vector<128x128xf32>
    %c0_3 = arith.constant 0 : index
    %c0_4 = arith.constant 0 : index
    %3 = vector.load %arg3[%c0_3, %c0_4] : memref<1x128xf32, #tpu.memory_space<vmem>>, vector<1x128xf32>
    %4 = vector.broadcast %3 : vector<1x128xf32> to vector<128x128xf32>
    %5 = arith.addf %2, %4 : vector<128x128xf32>
    %cst_5 = arith.constant 0.000000e+00 : f32
    %6 = vector.broadcast %cst_5 : f32 to vector<128x128xf32>
    %7 = arith.maximumf %5, %6 : vector<128x128xf32>
    %8 = arith.truncf %7 : vector<128x128xf32> to vector<128x128xbf16>
    %c0_6 = arith.constant 0 : index
    %c0_7 = arith.constant 0 : index
    %9 = vector.load %arg4[%c0_6, %c0_7] : memref<128x128xbf16, #tpu.memory_space<vmem>>, vector<128x128xbf16>
    tpu.vector_store %arg4[%c0_6, %c0_7], %8 {strides = array<i32>} : memref<128x128xbf16, #tpu.memory_space<vmem>>, vector<128x128xbf16>,
    return
  }
  func.func @transform_0(%arg0: i32) -> (i32, i32) {
    %c0_i32 = arith.constant 0 : i32
    %c0_i32_0 = arith.constant 0 : i32
    return %arg0, %c0_i32 : i32, i32
  }
  func.func @transform_1(%arg0: i32) -> (i32, i32) {
    %c0_i32 = arith.constant 0 : i32
    %c0_i32_0 = arith.constant 0 : i32
    %c0_i32_1 = arith.constant 0 : i32
    return %c0_i32, %c0_i32_0 : i32, i32
  }
  func.func @transform_2(%arg0: i32) -> (i32, i32) {
    %c0_i32 = arith.constant 0 : i32
    %c0_i32_0 = arith.constant 0 : i32
    %c0_i32_1 = arith.constant 0 : i32
    return %c0_i32, %c0_i32_0 : i32, i32
  }
  func.func @transform_3(%arg0: i32) -> (i32, i32) {
    %c0_i32 = arith.constant 0 : i32
    %c0_i32_0 = arith.constant 0 : i32
    return %arg0, %c0_i32 : i32, i32
  }
}

module attributes {stable_mosaic.version = 11 : i64} {
  func.func @_fused_linear_kernel(%arg0: i32, %arg1: memref<16x1024xbf16, #tpu.memory_space<vmem>>, %arg2: memref<1024x128xbf16, #tpu.memory_space<vmem>>, %arg3: memref<1x128xf32, #tpu.memory_space<vmem>>, %arg4: memref<128x128xbf16, #tpu.memory_space<vmem>>, %arg5: memref<1x128xf32, #tpu.memory_space<vmem>>, %arg6: memref<16x128xf32, #tpu.memory_space<vmem>>, %arg7: memref<16x128xf32, #tpu.memory_space<vmem>>) attributes {dimension_semantics = [#tpu.dimension_semantics<arbitrary>], iteration_bounds = array<i64: 11>, scalar_prefetch = 0 : i64, scratch_operands = 1 : i64, tpu.core_type = #tpu.core_type<tc>, window_params = [{transform_indices = @transform_0, window_bounds = array<i64: 16, 1024>}, {transform_indices = @transform_1, window_bounds = array<i64: 1024, 128>}, {pipeline_mode = #tpu.pipeline_mode<synchronous>, transform_indices = @transform_2, window_bounds = array<i64: 1, 128>}, {pipeline_mode = #tpu.pipeline_mode<synchronous>, transform_indices = @transform_3, window_bounds = array<i64: 128, 128>}, {pipeline_mode = #tpu.pipeline_mode<synchronous>, transform_indices = @transform_4, window_bounds = array<i64: 1, 128>}, {pipeline_mode = #tpu.pipeline_mode<synchronous>, transform_indices = @transform_5, window_bounds = array<i64: 16, 128>}]} {
    %c0_i32 = arith.constant 0 : i32
    %0 = arith.cmpi eq, %arg0, %c0_i32 : i32
    %1 = arith.extui %0 : i1 to i32
    %c0_i32_0 = arith.constant 0 : i32
    %2 = arith.cmpi ne, %1, %c0_i32_0 : i32
    scf.if %2 {
      %cst_9 = arith.constant 0.000000e+00 : f32
      %12 = vector.broadcast %cst_9 : f32 to vector<16x128xf32>
      %c0_10 = arith.constant 0 : index
      %c0_11 = arith.constant 0 : index
      %13 = vector.load %arg7[%c0_10, %c0_11] : memref<16x128xf32, #tpu.memory_space<vmem>>, vector<16x128xf32>
      tpu.vector_store %arg7[%c0_10, %c0_11], %12 {strides = array<i32>} : memref<16x128xf32, #tpu.memory_space<vmem>>, vector<16x128xf32>,
    } else {
    }
    %c0 = arith.constant 0 : index
    %c0_1 = arith.constant 0 : index
    %3 = vector.load %arg7[%c0, %c0_1] : memref<16x128xf32, #tpu.memory_space<vmem>>, vector<16x128xf32>
    %c0_2 = arith.constant 0 : index
    %c0_3 = arith.constant 0 : index
    %4 = vector.load %arg1[%c0_2, %c0_3] : memref<16x1024xbf16, #tpu.memory_space<vmem>>, vector<16x1024xbf16>
    %c0_4 = arith.constant 0 : index
    %c0_5 = arith.constant 0 : index
    %5 = vector.load %arg2[%c0_4, %c0_5] : memref<1024x128xbf16, #tpu.memory_space<vmem>>, vector<1024x128xbf16>
    %cst = arith.constant dense<0.000000e+00> : vector<16x128xf32>
    %6 = tpu.matmul %4, %5, %cst {dimension_numbers = #tpu.dot_dimension_numbers<[1], [0], [0], [1], [0, 0, 1, 1], [], []>} : vector<16x1024xbf16>, vector<1024x128xbf16>, vector<16x128xf32> -> vector<16x128xf32>
    %7 = arith.addf %3, %6 : vector<16x128xf32>
    %c0_6 = arith.constant 0 : index
    %c0_7 = arith.constant 0 : index
    %8 = vector.load %arg7[%c0_6, %c0_7] : memref<16x128xf32, #tpu.memory_space<vmem>>, vector<16x128xf32>
    tpu.vector_store %arg7[%c0_6, %c0_7], %7 {strides = array<i32>} : memref<16x128xf32, #tpu.memory_space<vmem>>, vector<16x128xf32>,
    %c10_i32 = arith.constant 10 : i32
    %9 = arith.cmpi eq, %arg0, %c10_i32 : i32
    %10 = arith.extui %9 : i1 to i32
    %c0_i32_8 = arith.constant 0 : i32
    %11 = arith.cmpi ne, %10, %c0_i32_8 : i32
    scf.if %11 {
      %c0_9 = arith.constant 0 : index
      %c0_10 = arith.constant 0 : index
      %12 = vector.load %arg7[%c0_9, %c0_10] : memref<16x128xf32, #tpu.memory_space<vmem>>, vector<16x128xf32>
      %c0_11 = arith.constant 0 : index
      %c0_12 = arith.constant 0 : index
      %13 = vector.load %arg3[%c0_11, %c0_12] : memref<1x128xf32, #tpu.memory_space<vmem>>, vector<1x128xf32>
      %14 = vector.broadcast %13 : vector<1x128xf32> to vector<16x128xf32>
      %15 = arith.addf %12, %14 : vector<16x128xf32>
      %cst_13 = arith.constant 0.000000e+00 : f32
      %16 = vector.broadcast %cst_13 : f32 to vector<16x128xf32>
      %17 = arith.maximumf %15, %16 : vector<16x128xf32>
      %18 = arith.truncf %17 : vector<16x128xf32> to vector<16x128xbf16>
      %c0_14 = arith.constant 0 : index
      %c0_15 = arith.constant 0 : index
      %19 = vector.load %arg4[%c0_14, %c0_15] : memref<128x128xbf16, #tpu.memory_space<vmem>>, vector<128x128xbf16>
      %cst_16 = arith.constant dense<0.000000e+00> : vector<16x128xf32>
      %20 = tpu.matmul %18, %19, %cst_16 {dimension_numbers = #tpu.dot_dimension_numbers<[1], [0], [0], [1], [0, 0, 1, 1], [], []>} : vector<16x128xbf16>, vector<128x128xbf16>, vector<16x128xf32> -> vector<16x128xf32>
      %c0_17 = arith.constant 0 : index
      %c0_18 = arith.constant 0 : index
      %21 = vector.load %arg5[%c0_17, %c0_18] : memref<1x128xf32, #tpu.memory_space<vmem>>, vector<1x128xf32>
      %22 = vector.broadcast %21 : vector<1x128xf32> to vector<16x128xf32>
      %23 = arith.addf %20, %22 : vector<16x128xf32>
      %c0_19 = arith.constant 0 : index
      %c0_20 = arith.constant 0 : index
      %24 = vector.load %arg6[%c0_19, %c0_20] : memref<16x128xf32, #tpu.memory_space<vmem>>, vector<16x128xf32>
      tpu.vector_store %arg6[%c0_19, %c0_20], %23 {strides = array<i32>} : memref<16x128xf32, #tpu.memory_space<vmem>>, vector<16x128xf32>,
    } else {
    }
    return
  }
  func.func @transform_0(%arg0: i32) -> (i32, i32) {
    %c0_i32 = arith.constant 0 : i32
    %c0_i32_0 = arith.constant 0 : i32
    return %c0_i32, %arg0 : i32, i32
  }
  func.func @transform_1(%arg0: i32) -> (i32, i32) {
    %c0_i32 = arith.constant 0 : i32
    %c0_i32_0 = arith.constant 0 : i32
    return %arg0, %c0_i32 : i32, i32
  }
  func.func @transform_2(%arg0: i32) -> (i32, i32) {
    %c0_i32 = arith.constant 0 : i32
    %c0_i32_0 = arith.constant 0 : i32
    %c0_i32_1 = arith.constant 0 : i32
    return %c0_i32, %c0_i32_0 : i32, i32
  }
  func.func @transform_3(%arg0: i32) -> (i32, i32) {
    %c0_i32 = arith.constant 0 : i32
    %c0_i32_0 = arith.constant 0 : i32
    %c0_i32_1 = arith.constant 0 : i32
    return %c0_i32, %c0_i32_0 : i32, i32
  }
  func.func @transform_4(%arg0: i32) -> (i32, i32) {
    %c0_i32 = arith.constant 0 : i32
    %c0_i32_0 = arith.constant 0 : i32
    %c0_i32_1 = arith.constant 0 : i32
    return %c0_i32, %c0_i32_0 : i32, i32
  }
  func.func @transform_5(%arg0: i32) -> (i32, i32) {
    %c0_i32 = arith.constant 0 : i32
    %c0_i32_0 = arith.constant 0 : i32
    %c0_i32_1 = arith.constant 0 : i32
    return %c0_i32, %c0_i32_0 : i32, i32
  }
}

</mosaic_0001>

<bundles_post_ra>
// kernel: ctiny_forward.3
= control target key start
LH: loop header
LB: loop body
LE: loop exit
PB: predicated region body
PF: predicated region fallthrough
CT: control target
= control target key end

     0   :  { %8 = vsyncpa [#allocation3], 0  ;;  %s1051_s0 = inlined_call_operand.vmem [shape: bf16[1920,128], index: 0, kind: input, shape index: {}]   ;;  %s1052_s1 = inlined_call_operand.hbm [shape: bf16[128,128], index: 1, kind: input, shape index: {}]   ;;  %s1053_s2 = inlined_call_operand.hbm [shape: f32[1,128], index: 2, kind: input, shape index: {}]   ;;  %s1054_s3 = inlined_call_operand.vmem [shape: bf16[1920,128], index: 3, kind: output, shape index: {}]  }
   0x1   :  { %9 = vsyncpa [#allocation5], 0  ;;  %s927_s12 = smov 0  }
   0x2 LB: > { %s609_s13 = sadd.s32 4294967295, %s901_s12   ;;  %p611_p0 = scmp.ge.s32.totalorder %s901_s12, 1  ;;  %s901_s12 = sphi %s927_s12, %s15_s12  }
   0x3   : > { %p114_p1 = scmp.lt.s32.totalorder %s901_s12, 16  ;;  %s903_s14 = smov [#allocation2]  }
   0x4   : > { %s126_s15 = sshll.u32 %s903_s14, 4  ;;  %p941_p3 = scmp.eq.s32.totalorder %s609_s13, 0  ;;  %s127_s15 = int_to_ptr.vmem [resolvable:$true] %s126_s15 }
   0x5   : > { %p935_p2 = pnand %p611_p0, %p114_p1  ;;  %s904_s18 = smov [#allocation4]  }
   0x6   : > { %s1059_s17 = scalar_select %p941_p3, 1, 0 }
   0x7   : > { %s1058_s16 = scalar_select %p935_p2, 1, 0 }
   0x8   : > { %p792_p4 = pneg %p935_p2  ;;  %s140_s19 = sshll.u32 %s904_s18, 4  ;;  %s953_s19 = int_to_ptr.vmem [resolvable:$true] %s140_s19 }
   0x9   : > { %s831_s23 = scalar_lea.hbm %s1052_s1, 1024 }
   0xa   : > { %p949_p5 = pnand %p941_p3, %p792_p4  ;;  %p832_p6 = scmp.ne.s32.totalorder %s1052_s1, %s831_s23 }
   0xb   : > { %p838_p10 = scmp.lt.u32.totalorder %s831_s23, %s1052_s1 }
   0xc   : > { %p833_p7 = pneg %p949_p5 }
   0xe   : > { %p834_p8 = pnand %p833_p7, %p832_p6 }
  0x10   : > { %p835_p9 = pneg %p834_p8 }
  0x12   : > { %p840_p11 = pnand %p838_p10, %p835_p9 }
  0x14   : > { %843 = shalt.err (!%p840_p11)
}
  0x15   : > { %s844_s28 = scalar_lea.vmem %s127_s15, 1024  ;;  %p852_p1 = scmp.lt.s32.totalorder %s127_s15, %s127_s15 }
  0x16   : > { %p845_p12 = scmp.ne.s32.totalorder %s127_s15, %s844_s28  ;;  %p853_p4 = scmp.lt.s32.totalorder %s844_s28, %s844_s28 }
  0x18   : > { %p847_p13 = pnand %p845_p12, %p833_p7  ;;  %p854_p3 = por %p853_p4, %p852_p1 }
  0x1a   : > { %p848_p0 = pneg %p847_p13 }
  0x1c   : > { %p855_p2 = pnand %p854_p3, %p848_p0 }
  0x1e   : > { %858 = shalt.err (!%p855_p2)
}
  0x1f   : > { %s905_s29 = smov 64   ;;  %s906_s30 = smov 4  }
  0x20   : > { %795 = dma.hbm_to_vmem [thread:$0]  (!%p949_p5), %s1052_s1, 1024, %s127_s15, [#allocation3], %s905_s29, %s905_s29, %s906_s30  }
  0x21   : > { %s859_s8 = scalar_lea.hbm %s1053_s2, 16 }
  0x22   : > { %p860_p6 = scmp.ne.s32.totalorder %s1053_s2, %s859_s8  ;;  %p866_p8 = scmp.lt.u32.totalorder %s859_s8, %s1053_s2 }
  0x24   : > { %p862_p2 = pnand %p860_p6, %p833_p7 }
  0x26   : > { %p863_p3 = pneg %p862_p2 }
  0x28   : > { %p868_p9 = pnand %p866_p8, %p863_p3 }
  0x2a   : > { %871 = shalt.err (!%p868_p9)
}
  0x2b   : > { %s872_s15 = scalar_lea.vmem %s953_s19, 16  ;;  %s879_s18 = scalar_lea.vmem %s953_s19, 32 }
  0x2c   : > { %p873_p10 = scmp.ne.s32.totalorder %s953_s19, %s872_s15  ;;  %p880_p13 = scmp.lt.s32.totalorder %s953_s19, %s953_s19 }
  0x2d   : > { %p881_p0 = scmp.lt.s32.totalorder %s879_s18, %s872_s15 }
  0x2e   : > { %p875_p11 = pnand %p873_p10, %p833_p7 }
  0x2f   : > { %p882_p1 = por %p881_p0, %p880_p13 }
  0x30   : > { %p876_p12 = pneg %p875_p11 }
  0x32   : > { %p883_p4 = pnand %p882_p1, %p876_p12 }
  0x34   : > { %886 = shalt.err (!%p883_p4)
}
  0x35   : > { %798 = dma.hbm_to_vmem [thread:$0]  (!%p949_p5), %s1053_s2, 16, %s953_s19, [#allocation5]  }
  0x36   : > { %p1061_p6 = scmp.ne.s32.totalorder %s1058_s16, 0 }
  0x37   : > { %p1062_p7 = scmp.ne.s32.totalorder (!%p1061_p6), %s1059_s17, 0 }
  0x38   : > { %162 = sbr.rel (%p1061_p6) target bundleno = 329 (0x149), region = 32 }
  0x3f   : > { %892 = dma.done.wait (%p1062_p7), [#allocation3], 1024  }
  0x40   : > { %894 = vsyncadd (%p1062_p7), [#allocation3], 4294966272 }
  0x41   : > { %896 = dma.done.wait (%p1062_p7), [#allocation5], 16  }
  0x42   : > { %898 = vsyncadd (%p1062_p7), [#allocation5], 4294967280  ;;  %s618_s20 = sshll.u32 %s609_s13, 4  ;;  %v815_v0 = vld [vmem:[#allocation2] sm:$0xff]   ;;  %v816_v1 = vld [vmem:[#allocation2 + $0x8] sm:$0xff]  }
  0x43   : > { %p191_p2 = scmp.lt.s32.totalorder %s618_s20, 239  ;;  %736 = vmatprep.subr.bf16.mxu0 %v815_v0  ;;  %768 = vmatprep.subr.bf16.mxu1 %v815_v0  ;;  %v817_v2 = vld [vmem:[#allocation2 + $0x10] sm:$0xff]   ;;  %v818_v3 = vld [vmem:[#allocation2 + $0x18] sm:$0xff]   ;;  %v819_v6 = vld [vmem:[#allocation2 + $0x20] sm:$0xff]  }
  0x44   : > { %737 = vmatpush3.bf16.msra.mxu0 %v815_v0  ;;  %776 = vmatpush3.bf16.msra.mxu1 %v815_v0  ;;  %v820_v7 = vld [vmem:[#allocation2 + $0x28] sm:$0xff]   ;;  %v821_v8 = vld [vmem:[#allocation2 + $0x30] sm:$0xff]   ;;  %v822_v9 = vld [vmem:[#allocation2 + $0x38] sm:$0xff]  }
  0x45   : > { %s1064_s20 = smov (!%p191_p2, %s618_s20), 239  ;;  %738 = vmatprep.subr.bf16.mxu0 %v816_v1  ;;  %769 = vmatprep.subr.bf16.mxu1 %v816_v1  ;;  %v622_v16 = vld [vmem:[#allocation4] ss:$0 sm:$0xff] }
  0x46   : > { %s619_s16 = sshll.u32 %s1064_s20, 2 }
  0x47   : > { %s1023_s13 = scalar_lea.vmem %s1051_s0, %s619_s16  ;;  %s1038_s25 = scalar_lea.vmem %s1054_s3, %s619_s16 }
  0x48   : > { %739 = vmatpush3.bf16.msra.mxu0 %v816_v1  ;;  %777 = vmatpush3.bf16.msra.mxu1 %v816_v1  ;;  %v823_v4 = vld [vmem:[%s1023_s13] sm:$0xff]   ;;  %v825_v10 = vld [vmem:[%s1023_s13 + $0x8] sm:$0xff]   ;;  %v827_v12 = vld [vmem:[%s1023_s13 + $0x10] sm:$0xff]  }
  0x49   : > { %740 = vmatprep.subr.bf16.mxu0 %v817_v2  ;;  %770 = vmatprep.subr.bf16.mxu1 %v817_v2  ;;  %v824_v5 = vld [vmem:[%s1023_s13 + $0x20] sm:$0xff]   ;;  %v826_v11 = vld [vmem:[%s1023_s13 + $0x28] sm:$0xff]   ;;  %v828_v13 = vld [vmem:[%s1023_s13 + $0x30] sm:$0xff]  }
  0x4a   : > { %752 = vmatprep.mubr.bf16.mxu0 %v823_v4  ;;  %760 = vmatprep.mubr.bf16.mxu1 %v824_v5  ;;  %v829_v14 = vld [vmem:[%s1023_s13 + $0x18] sm:$0xff]  }
  0x4b   : > { %v830_v15 = vld [vmem:[%s1023_s13 + $0x38] sm:$0xff]  }
  0x4c   : > { %741 = vmatpush3.bf16.msra.mxu0 %v817_v2  ;;  %778 = vmatpush3.bf16.msra.mxu1 %v817_v2 }
  0x4d   : > { %742 = vmatprep.subr.bf16.mxu0 %v818_v3  ;;  %771 = vmatprep.subr.bf16.mxu1 %v818_v3 }
  0x50   : > { %743 = vmatpush3.bf16.msra.mxu0 %v818_v3  ;;  %779 = vmatpush3.bf16.msra.mxu1 %v818_v3 }
  0x51   : > { %744 = vmatprep.subr.bf16.mxu0 %v819_v6  ;;  %772 = vmatprep.subr.bf16.mxu1 %v819_v6 }
  0x54   : > { %745 = vmatpush3.bf16.msra.mxu0 %v819_v6  ;;  %780 = vmatpush3.bf16.msra.mxu1 %v819_v6 }
  0x55   : > { %746 = vmatprep.subr.bf16.mxu0 %v820_v7  ;;  %773 = vmatprep.subr.bf16.mxu1 %v820_v7 }
  0x58   : > { %747 = vmatpush3.bf16.msra.mxu0 %v820_v7  ;;  %781 = vmatpush3.bf16.msra.mxu1 %v820_v7 }
  0x59   : > { %748 = vmatprep.subr.bf16.mxu0 %v821_v8  ;;  %774 = vmatprep.subr.bf16.mxu1 %v821_v8 }
  0x5c   : > { %749 = vmatpush3.bf16.msra.mxu0 %v821_v8  ;;  %782 = vmatpush3.bf16.msra.mxu1 %v821_v8 }
  0x5d   : > { %750 = vmatprep.subr.bf16.mxu0 %v822_v9  ;;  %775 = vmatprep.subr.bf16.mxu1 %v822_v9 }
  0x60   : > { %751 = vmatpush3.bf16.msra.mxu0 %v822_v9  ;;  %783 = vmatpush3.bf16.msra.mxu1 %v822_v9 }
  0x63   : > { %753 = vmatmul.mubr.bf16.vlgmr.msra.gmra.mrb[0].mxu0 %v825_v10  ;;  %761 = vmatmul.mubr.bf16.vlgmr.msra.gmra.mrb[0].mxu1 %v826_v11 }
  0x64   : > { %756 = vmatprep.mubr.bf16.mxu0 %v827_v12  ;;  %764 = vmatprep.mubr.bf16.mxu1 %v828_v13 }
  0x6b   : > { %757 = vmatmul.mubr.bf16.gmra.mrb[4].mxu0 %v829_v14  ;;  %765 = vmatmul.mubr.bf16.gmra.mrb[4].mxu1 %v830_v15 }
 0x136   : > { %v754_v17 = vpop.f32.mrb[0].mxu0  ;;  %v762_v18 = vpop.f32.mrb[0].mxu1 }
 0x137   : > { %v381_v19 = vadd.f32 %v754_v17, %v622_v16  ;;  %v413_v20 = vadd.f32 %v762_v18, %v622_v16  ;;  %v372_v21 = vpop.f32.mrb[1].mxu0  ;;  %v404_v22 = vpop.f32.mrb[1].mxu1 }
 0x138   : > { %v373_v23 = vadd.f32 %v622_v16, %v372_v21  ;;  %v405_v24 = vadd.f32 %v622_v16, %v404_v22  ;;  %v755_v25 = vpop.f32.mrb[2].mxu0  ;;  %v763_v26 = vpop.f32.mrb[2].mxu1 }
 0x139   : > { %v384_v27 = vadd.f32 %v755_v25, %v622_v16  ;;  %v416_v28 = vadd.f32 %v763_v26, %v622_v16  ;;  %v375_v29 = vpop.f32.mrb[3].mxu0  ;;  %v407_v30 = vpop.f32.mrb[3].mxu1  ;;  %v437_v33 = vmax.f32 %v381_v19, 0.0  ;;  %v445_v34 = vmax.f32 %v413_v20, 0.0 }
 0x13a   : > { %v376_v31 = vadd.f32 %v622_v16, %v375_v29  ;;  %v408_v32 = vadd.f32 %v622_v16, %v407_v30  ;;  %v435_v37 = vmax.f32 %v373_v23, 0.0  ;;  %v443_v38 = vmax.f32 %v405_v24, 0.0 }
 0x13b   : > { %v438_v35 = vmax.f32 %v384_v27, 0.0  ;;  %v446_v36 = vmax.f32 %v416_v28, 0.0 }
 0x13c   : > { %v436_v39 = vmax.f32 %v376_v31, 0.0  ;;  %v444_v40 = vmax.f32 %v408_v32, 0.0 }
 0x13d   : > { %v681_v41 = vpack.c.bf16 %v438_v35, %v437_v33  ;;  %v701_v42 = vpack.c.bf16 %v446_v36, %v445_v34 }
 0x13e   : > { %v676_v43 = vpack.c.bf16 %v436_v39, %v435_v37  ;;  %v696_v44 = vpack.c.bf16 %v444_v40, %v443_v38  ;;  %v758_v45 = vpop.f32.mrb[4].mxu0  ;;  %v766_v46 = vpop.f32.mrb[4].mxu1 }
 0x13f   : > { %713 = vst [vmem:[%s1038_s25 + $0x8] sm:$0xff] %v681_v41   ;;  %717 = vst [vmem:[%s1038_s25 + $0x28] sm:$0xff] %v701_v42   ;;  %v397_v47 = vadd.f32 %v758_v45, %v622_v16  ;;  %v429_v48 = vadd.f32 %v766_v46, %v622_v16  ;;  %v388_v49 = vpop.f32.mrb[5].mxu0  ;;  %v420_v50 = vpop.f32.mrb[5].mxu1 }
 0x140   : > { %677 = vst [vmem:[%s1038_s25] sm:$0xff] %v676_v43   ;;  %716 = vst [vmem:[%s1038_s25 + $0x20] sm:$0xff] %v696_v44   ;;  %v389_v51 = vadd.f32 %v622_v16, %v388_v49  ;;  %v421_v52 = vadd.f32 %v622_v16, %v420_v50  ;;  %v759_v53 = vpop.f32.mrb[6].mxu0  ;;  %v767_v54 = vpop.f32.mrb[6].mxu1 }
 0x141   : > { %v400_v55 = vadd.f32 %v759_v53, %v622_v16  ;;  %v432_v56 = vadd.f32 %v767_v54, %v622_v16  ;;  %v391_v57 = vpop.f32.mrb[7].mxu0  ;;  %v423_v58 = vpop.f32.mrb[7].mxu1  ;;  %v441_v61 = vmax.f32 %v397_v47, 0.0  ;;  %v449_v62 = vmax.f32 %v429_v48, 0.0 }
 0x142   : > { %v392_v59 = vadd.f32 %v622_v16, %v391_v57  ;;  %v424_v60 = vadd.f32 %v622_v16, %v423_v58  ;;  %v439_v1 = vmax.f32 %v389_v51, 0.0  ;;  %v447_v2 = vmax.f32 %v421_v52, 0.0 }
 0x143   : > { %v442_v63 = vmax.f32 %v400_v55, 0.0  ;;  %v450_v0 = vmax.f32 %v432_v56, 0.0 }
 0x144   : > { %v440_v3 = vmax.f32 %v392_v59, 0.0  ;;  %v448_v4 = vmax.f32 %v424_v60, 0.0 }
 0x145   : > { %v691_v5 = vpack.c.bf16 %v442_v63, %v441_v61  ;;  %v711_v6 = vpack.c.bf16 %v450_v0, %v449_v62 }
 0x146   : > { %v686_v7 = vpack.c.bf16 %v440_v3, %v439_v1  ;;  %v706_v8 = vpack.c.bf16 %v448_v4, %v447_v2 }
 0x147   : > { %715 = vst [vmem:[%s1038_s25 + $0x18] sm:$0xff] %v691_v5   ;;  %719 = vst [vmem:[%s1038_s25 + $0x38] sm:$0xff] %v711_v6  }
 0x148   : > { %714 = vst [vmem:[%s1038_s25 + $0x10] sm:$0xff] %v686_v7   ;;  %718 = vst [vmem:[%s1038_s25 + $0x30] sm:$0xff] %v706_v8  }
 0x149 PF: > { %s15_s12 = sadd.s32 1, %s901_s12  }
 0x14a   : > { %p12_p5 = scmp.ge.s32.totalorder %s15_s12, 17  }
 0x14c   :  { %14 = sbr.rel (!%p12_p5) target bundleno = 2 (0x2), region = 71 }
 0x153   :  { %553 = vsyncpa [#allocation3], 1 }
 0x154   :  { %555 = vsyncpa [#allocation3 + $0x1], 1 }
 0x155   :  { %556 = vsyncpa [#allocation5], 1 }

// kernel: ctiny_forward.4
= control target key start
LH: loop header
LB: loop body
LE: loop exit
PB: predicated region body
PF: predicated region fallthrough
CT: control target
= control target key end

     0   :  { %s2141_s12 = smov 0   ;;  %s2472_s0 = inlined_call_operand.vmem [shape: bf16[384,896], index: 0, kind: input, shape index: {}]   ;;  %s2473_s1 = inlined_call_operand.vmem [shape: bf16[896,128], index: 1, kind: input, shape index: {}]   ;;  %s2474_s2 = inlined_call_operand.vmem [shape: f32[1,128], index: 2, kind: input, shape index: {}]   ;;  %s2475_s3 = inlined_call_operand.vmem [shape: bf16[384,128], index: 3, kind: output, shape index: {}]  }
   0x1 LB: > { %s1525_s13 = sadd.s32 4294967295, %s2119_s12   ;;  %p1529_p0 = scmp.ge.s32.totalorder %s2119_s12, 1  ;;  %s2119_s12 = sphi %s2141_s12, %s13_s12  }
   0x2   : > { %p139_p1 = scmp.lt.s32.totalorder %s2119_s12, 4 }
   0x4   : > { %p140_p2 = pnand %p1529_p0, %p139_p1 }
   0x5   : > { %v1977_v0 = vld [vmem:[%s2473_s1 + $0x40] sm:$0xff] (!%p140_p2)   ;;  %v1981_v4 = vld [vmem:[%s2473_s1 + $0x48] sm:$0xff] (!%p140_p2)   ;;  %v1985_v8 = vld [vmem:[%s2473_s1 + $0x50] sm:$0xff] (!%p140_p2)   ;;  %s1530_s17 = sshll.u32 (!%p140_p2), %s1525_s13, 4 }
   0x6   : > { %143 = sbr.rel (%p140_p2) target bundleno = 384 (0x180), region = 32  ;;  %v1978_v1 = vld [vmem:[%s2473_s1] sm:$0xff] (!%p140_p2)   ;;  %1728 = vmatprep.subr.bf16.mxu0 (!%p140_p2), %v1977_v0  ;;  %v1982_v5 = vld [vmem:[%s2473_s1 + $0x8] sm:$0xff] (!%p140_p2)   ;;  %v1986_v9 = vld [vmem:[%s2473_s1 + $0x10] sm:$0xff] (!%p140_p2)   ;;  %p165_p3 = scmp.lt.s32.totalorder (!%p140_p2), %s1530_s17, 47 }
   0x7   : > { %v1979_v2 = vld [vmem:[%s2473_s1 + $0xc0] sm:$0xff] (!%p140_p2)   ;;  %1729 = vmatpush3.bf16.msra.mxu0 (!%p140_p2), %v1978_v1  ;;  %v1983_v6 = vld [vmem:[%s2473_s1 + $0xc8] sm:$0xff] (!%p140_p2)   ;;  %v1987_v10 = vld [vmem:[%s2473_s1 + $0xd0] sm:$0xff] (!%p140_p2)  }
   0x8   : > { %v1980_v3 = vld [vmem:[%s2473_s1 + $0x80] sm:$0xff] (!%p140_p2)   ;;  %1792 = vmatprep.subr.bf16.mxu1 (!%p140_p2), %v1979_v2  ;;  %1730 = vmatprep.subr.bf16.mxu0 (!%p140_p2), %v1981_v4  ;;  %v1984_v7 = vld [vmem:[%s2473_s1 + $0x88] sm:$0xff] (!%p140_p2)   ;;  %v1988_v11 = vld [vmem:[%s2473_s1 + $0x90] sm:$0xff] (!%p140_p2)  }
   0x9   : > { %1793 = vmatpush3.bf16.msra.mxu1 (!%p140_p2), %v1980_v3  ;;  %v1989_v12 = vld [vmem:[%s2473_s1 + $0x58] sm:$0xff] (!%p140_p2)   ;;  %v1993_v16 = vld [vmem:[%s2473_s1 + $0x60] sm:$0xff] (!%p140_p2)   ;;  %v1997_v20 = vld [vmem:[%s2473_s1 + $0x68] sm:$0xff] (!%p140_p2)  }
   0xa   : > { %1794 = vmatprep.subr.bf16.mxu1 (!%p140_p2), %v1983_v6  ;;  %v1990_v13 = vld [vmem:[%s2473_s1 + $0x18] sm:$0xff] (!%p140_p2)   ;;  %v1994_v17 = vld [vmem:[%s2473_s1 + $0x20] sm:$0xff] (!%p140_p2)   ;;  %v1998_v21 = vld [vmem:[%s2473_s1 + $0x28] sm:$0xff] (!%p140_p2)  }
   0xb   : > { %1731 = vmatpush3.bf16.msra.mxu0 (!%p140_p2), %v1982_v5  ;;  %v1991_v14 = vld [vmem:[%s2473_s1 + $0xd8] sm:$0xff] (!%p140_p2)   ;;  %v1995_v18 = vld [vmem:[%s2473_s1 + $0xe0] sm:$0xff] (!%p140_p2)   ;;  %v1999_v22 = vld [vmem:[%s2473_s1 + $0xe8] sm:$0xff] (!%p140_p2)  }
   0xc   : > { %1732 = vmatprep.subr.bf16.mxu0 (!%p140_p2), %v1985_v8  ;;  %v1992_v15 = vld [vmem:[%s2473_s1 + $0x98] sm:$0xff] (!%p140_p2)   ;;  %v1996_v19 = vld [vmem:[%s2473_s1 + $0xa0] sm:$0xff] (!%p140_p2)   ;;  %v2000_v23 = vld [vmem:[%s2473_s1 + $0xa8] sm:$0xff] (!%p140_p2)  }
   0xd   : > { %1795 = vmatpush3.bf16.msra.mxu1 %v1984_v7  ;;  %s2477_s17 = smov (!%p165_p3, %s1530_s17), 47  ;;  %v2001_v24 = vld [vmem:[%s2473_s1 + $0x70] sm:$0xff]   ;;  %v2005_v28 = vld [vmem:[%s2473_s1 + $0x78] sm:$0xff]   ;;  %v2012_v34 = vld [vmem:[%s2473_s1 + $0x140] sm:$0xff]  }
   0xe   : > { %1796 = vmatprep.subr.bf16.mxu1 %v1987_v10  ;;  %s1968_s14 = smul.u32 28, %s2477_s17  ;;  %v2002_v25 = vld [vmem:[%s2473_s1 + $0x30] sm:$0xff]   ;;  %v2006_v29 = vld [vmem:[%s2473_s1 + $0x38] sm:$0xff]   ;;  %v2016_v37 = vld [vmem:[%s2473_s1 + $0x100] sm:$0xff]  }
   0xf   : > { %1733 = vmatpush3.bf16.msra.mxu0 %v1986_v9  ;;  %v2003_v26 = vld [vmem:[%s2473_s1 + $0xf0] sm:$0xff]   ;;  %v2007_v30 = vld [vmem:[%s2473_s1 + $0xf8] sm:$0xff]   ;;  %v2020_v40 = vld [vmem:[%s2473_s1 + $0x148] sm:$0xff]  }
  0x10   : > { %1734 = vmatprep.subr.bf16.mxu0 %v1989_v12  ;;  %v2004_v27 = vld [vmem:[%s2473_s1 + $0xb0] sm:$0xff]   ;;  %s2244_s13 = scalar_lea.vmem %s2472_s0, %s1968_s14  ;;  %v2011_v33 = vld [vmem:[%s2473_s1 + $0xb8] sm:$0xff]   ;;  %v2023_v42 = vld [vmem:[%s2473_s1 + $0x108] sm:$0xff]  }
  0x11   : > { %1797 = vmatpush3.bf16.msra.mxu1 %v1988_v11  ;;  %v2008_v31 = vld [vmem:[%s2244_s13] ss:$28 sps:$4 sm:$0xff]   ;;  %v2013_v35 = vld [vmem:[%s2244_s13 + $0x8] ss:$28 sps:$4 sm:$0xff]   ;;  %v2019_v39 = vld [vmem:[%s2244_s13 + $0x38] ss:$28 sps:$4 sm:$0xff]  }
  0x12   : > { %1798 = vmatprep.subr.bf16.mxu1 %v1991_v14  ;;  %v2010_v32 = vld [vmem:[%s2244_s13 + $0x4] ss:$28 sps:$4 sm:$0xff]   ;;  %v2015_v36 = vld [vmem:[%s2244_s13 + $0xc] ss:$28 sps:$4 sm:$0xff]   ;;  %v2017_v38 = vld [vmem:[%s2244_s13 + $0x3c] ss:$28 sps:$4 sm:$0xff]  }
  0x13   : > { %1735 = vmatpush3.bf16.msra.mxu0 %v1990_v13  ;;  %1017 = vmatprep.mubr.bf16.mxu0 %v2010_v32  ;;  %v2021_v41 = vld [vmem:[%s2244_s13 + $0x44] ss:$28 sps:$4 sm:$0xff]   ;;  %v2025_v44 = vld [vmem:[%s2244_s13 + $0x74] ss:$28 sps:$4 sm:$0xff]   ;;  %v2029_v46 = vld [vmem:[%s2244_s13 + $0x7c] ss:$28 sps:$4 sm:$0xff]  }
  0x14   : > { %1736 = vmatprep.subr.bf16.mxu0 %v1993_v16  ;;  %1114 = vmatprep.mubr.bf16.mxu1 %v2015_v36  ;;  %v2024_v43 = vld [vmem:[%s2244_s13 + $0x40] ss:$28 sps:$4 sm:$0xff]   ;;  %v2028_v45 = vld [vmem:[%s2473_s1 + $0x150] sm:$0xff]   ;;  %v2033_v49 = vld [vmem:[%s2244_s13 + $0xac] ss:$28 sps:$4 sm:$0xff]  }
  0x15   : > { %1799 = vmatpush3.bf16.msra.mxu1 %v1992_v15  ;;  %v2031_v47 = vld [vmem:[%s2473_s1 + $0x110] sm:$0xff]   ;;  %v2036_v50 = vld [vmem:[%s2473_s1 + $0x158] sm:$0xff]   ;;  %v2044_v54 = vld [vmem:[%s2473_s1 + $0x160] sm:$0xff]  }
  0x16   : > { %1800 = vmatprep.subr.bf16.mxu1 %v1995_v18  ;;  %v2027_v48 = vld [vmem:[%s2244_s13 + $0x70] ss:$28 sps:$4 sm:$0xff]   ;;  %v2032_v51 = vld [vmem:[%s2244_s13 + $0x78] ss:$28 sps:$4 sm:$0xff]   ;;  %v2035_v55 = vld [vmem:[%s2244_s13 + $0xa8] ss:$28 sps:$4 sm:$0xff]  }
  0x17   : > { %1737 = vmatpush3.bf16.msra.mxu0 %v1994_v17  ;;  %v2039_v52 = vld [vmem:[%s2473_s1 + $0x118] sm:$0xff]   ;;  %v2037_v53 = vld [vmem:[%s2244_s13 + $0xb4] ss:$28 sps:$4 sm:$0xff]   ;;  %v2047_v56 = vld [vmem:[%s2473_s1 + $0x120] sm:$0xff]  }
  0x18   : > { %1738 = vmatprep.subr.bf16.mxu0 %v1997_v20  ;;  %v2041_v57 = vld [vmem:[%s2244_s13 + $0xe4] ss:$28 sps:$4 sm:$0xff]   ;;  %v2040_v59 = vld [vmem:[%s2244_s13 + $0xb0] ss:$28 sps:$4 sm:$0xff]   ;;  %v2050_v3 = vld [vmem:[%s2244_s13 + $0x11c] ss:$28 sps:$4 sm:$0xff]  }
  0x19   : > { %1801 = vmatpush3.bf16.msra.mxu1 %v1996_v19  ;;  %v2049_v58 = vld [vmem:[%s2473_s1 + $0x180] sm:$0xff]   ;;  %v2045_v60 = vld [vmem:[%s2244_s13 + $0xec] ss:$28 sps:$4 sm:$0xff]   ;;  %v2059_v0 = vld [vmem:[%s2473_s1 + $0x190] sm:$0xff]  }
  0x1a   : > { %1802 = vmatprep.subr.bf16.mxu1 %v1999_v22  ;;  %v2053_v61 = vld [vmem:[%s2473_s1 + $0x168] sm:$0xff]   ;;  %v2043_v1 = vld [vmem:[%s2244_s13 + $0xe0] ss:$28 sps:$4 sm:$0xff]   ;;  %v2063_v4 = vld [vmem:[%s2473_s1 + $0x170] sm:$0xff]  }
  0x1b   : > { %1739 = vmatpush3.bf16.msra.mxu0 %v1998_v21  ;;  %v2054_v62 = vld [vmem:[%s2473_s1 + $0x188] sm:$0xff]   ;;  %v2064_v5 = vld [vmem:[%s2473_s1 + $0x198] sm:$0xff]   ;;  %v2055_v6 = vld [vmem:[%s2244_s13 + $0x124] ss:$28 sps:$4 sm:$0xff]  }
  0x1c   : > { %1740 = vmatprep.subr.bf16.mxu0 %v2001_v24  ;;  %v2057_v63 = vld [vmem:[%s2473_s1 + $0x128] sm:$0xff]   ;;  %v2067_v7 = vld [vmem:[%s2473_s1 + $0x130] sm:$0xff]   ;;  %v2069_v8 = vld [vmem:[%s2473_s1 + $0x1a0] sm:$0xff]  }
  0x1d   : > { %1803 = vmatpush3.bf16.msra.mxu1 %v2000_v23  ;;  %v2048_v2 = vld [vmem:[%s2244_s13 + $0xe8] ss:$28 sps:$4 sm:$0xff]   ;;  %v2052_v9 = vld [vmem:[%s2244_s13 + $0x118] ss:$28 sps:$4 sm:$0xff]   ;;  %v2058_v11 = vld [vmem:[%s2244_s13 + $0x120] ss:$28 sps:$4 sm:$0xff]  }
  0x1e   : > { %1804 = vmatprep.subr.bf16.mxu1 %v2003_v26  ;;  %v2073_v10 = vld [vmem:[%s2473_s1 + $0x178] sm:$0xff]   ;;  %v2060_v12 = vld [vmem:[%s2244_s13 + $0x154] ss:$28 sps:$4 sm:$0xff]   ;;  %v2074_v13 = vld [vmem:[%s2473_s1 + $0x1a8] sm:$0xff]  }
  0x1f   : > { %1741 = vmatpush3.bf16.msra.mxu0 %v2002_v25  ;;  %v2077_v14 = vld [vmem:[%s2473_s1 + $0x138] sm:$0xff]   ;;  %v2079_v16 = vld [vmem:[%s2473_s1 + $0x1b0] sm:$0xff]   ;;  %v2070_v18 = vld [vmem:[%s2244_s13 + $0x18c] ss:$28 sps:$4 sm:$0xff]  }
  0x20   : > { %1742 = vmatprep.subr.bf16.mxu0 %v2005_v28  ;;  %v2065_v15 = vld [vmem:[%s2244_s13 + $0x15c] ss:$28 sps:$4 sm:$0xff]   ;;  %v2062_v17 = vld [vmem:[%s2244_s13 + $0x150] ss:$28 sps:$4 sm:$0xff]   ;;  %v2072_v22 = vld [vmem:[%s2244_s13 + $0x188] ss:$28 sps:$4 sm:$0xff]  }
  0x21   : > { %1805 = vmatpush3.bf16.msra.mxu1 %v2004_v27  ;;  %v2083_v19 = vld [vmem:[%s2473_s1 + $0x1b8] sm:$0xff]   ;;  %v2075_v21 = vld [vmem:[%s2244_s13 + $0x194] ss:$28 sps:$4 sm:$0xff]   ;;  %v2086_v27 = vld [vmem:[%s2244_s13 + $0x4c] ss:$28 sps:$4 sm:$0xff]  }
  0x22   : > { %1806 = vmatprep.subr.bf16.mxu1 %v2007_v30  ;;  %v2068_v20 = vld [vmem:[%s2244_s13 + $0x158] ss:$28 sps:$4 sm:$0xff]   ;;  %v2078_v24 = vld [vmem:[%s2244_s13 + $0x190] ss:$28 sps:$4 sm:$0xff]   ;;  %v2088_v30 = vld [vmem:[%s2244_s13 + $0x48] ss:$28 sps:$4 sm:$0xff]  }
  0x23   : > { %1743 = vmatpush3.bf16.msra.mxu0 %v2006_v29  ;;  %v2082_v23 = vld [vmem:[%s2244_s13 + $0x14] ss:$28 sps:$4 sm:$0xff]   ;;  %v2092_v29 = vld [vmem:[%s2244_s13 + $0x88] ss:$28 sps:$4 sm:$0xff]   ;;  %v2093_v32 = vld [vmem:[%s2244_s13 + $0xc0] ss:$28 sps:$4 sm:$0xff]  }
  0x24   : > { %1856 = vmatprep.subr.bf16.mxu0 %v2012_v34  ;;  %v2084_v25 = vld [vmem:[%s2244_s13 + $0x18] ss:$28 sps:$4 sm:$0xff]   ;;  %v2080_v26 = vld [vmem:[%s2244_s13 + $0x10] ss:$28 sps:$4 sm:$0xff]   ;;  %v2091_v34 = vld [vmem:[%s2244_s13 + $0x80] ss:$28 sps:$4 sm:$0xff]  }
  0x25   : > { %1807 = vmatpush3.bf16.msra.mxu1 %v2011_v33  ;;  %v2085_v28 = vld [vmem:[%s2244_s13 + $0x50] ss:$28 sps:$4 sm:$0xff]   ;;  %v2100_v33 = vld [vmem:[%s2244_s13 + $0xf8] ss:$28 sps:$4 sm:$0xff]  }
  0x26   : > { %1018 = vmatmul.mubr.bf16.vlgmr.msra.gmra.mrb[0].mxu0 %v2008_v31  ;;  %1936 = vmatprep.subr.bf16.mxu1 %v2049_v58  ;;  %v2089_v31 = vld [vmem:[%s2244_s13 + $0x84] ss:$28 sps:$4 sm:$0xff]   ;;  %v2101_v36 = vld [vmem:[%s2244_s13 + $0x130] ss:$28 sps:$4 sm:$0xff]  }
  0x27   : > { %1857 = vmatpush3.bf16.msra.mxu0 %v2016_v37  ;;  %1025 = vmatprep.mubr.bf16.mxu0 %v2017_v38  ;;  %v2108_v37 = vld [vmem:[%s2244_s13 + $0x168] ss:$28 sps:$4 sm:$0xff]   ;;  %v2096_v38 = vld [vmem:[%s2244_s13 + $0xb8] ss:$28 sps:$4 sm:$0xff]  }
  0x28   : > { %1115 = vmatmul.mubr.bf16.vlgmr.msra.gmra.mrb[0].mxu1 %v2013_v35  ;;  %1858 = vmatprep.subr.bf16.mxu0 %v2020_v40  ;;  %v2094_v35 = vld [vmem:[%s2244_s13 + $0xbc] ss:$28 sps:$4 sm:$0xff]  }
  0x29   : > { %1122 = vmatprep.mubr.bf16.mxu1 %v2021_v41  ;;  %1937 = vmatpush3.bf16.msra.mxu1 %v2049_v58  ;;  %v2109_v40 = vld [vmem:[%s2244_s13 + $0x1a0] ss:$28 sps:$4 sm:$0xff]   ;;  %v2099_v41 = vld [vmem:[%s2244_s13 + $0xf0] ss:$28 sps:$4 sm:$0xff]  }
  0x2a   : > { %1938 = vmatprep.subr.bf16.mxu1 %v2054_v62 }
  0x2b   : > { %1859 = vmatpush3.bf16.msra.mxu0 %v2023_v42  ;;  %v2102_v42 = vld [vmem:[%s2244_s13 + $0x12c] ss:$28 sps:$4 sm:$0xff]  }
  0x2c   : > { %1860 = vmatprep.subr.bf16.mxu0 %v2028_v45  ;;  %v2107_v45 = vld [vmem:[%s2244_s13 + $0x160] ss:$28 sps:$4 sm:$0xff]  }
  0x2d   : > { %1939 = vmatpush3.bf16.msra.mxu1 %v2054_v62 }
  0x2e   : > { %1026 = vmatmul.mubr.bf16.gmra.mrb[4].mxu0 %v2019_v39  ;;  %1940 = vmatprep.subr.bf16.mxu1 %v2059_v0  ;;  %v2097_v39 = vld [vmem:[%s2244_s13 + $0xf4] ss:$28 sps:$4 sm:$0xff]  }
  0x2f   : > { %1033 = vmatprep.mubr.bf16.mxu0 %v2025_v44  ;;  %1861 = vmatpush3.bf16.msra.mxu0 %v2031_v47  ;;  %v2105_v44 = vld [vmem:[%s2244_s13 + $0x164] ss:$28 sps:$4 sm:$0xff]   ;;  %v2112_v47 = vld [vmem:[%s2244_s13 + $0x198] ss:$28 sps:$4 sm:$0xff]  }
  0x30   : > { %1123 = vmatmul.mubr.bf16.gmra.mrb[4].mxu1 %v2024_v43  ;;  %1862 = vmatprep.subr.bf16.mxu0 %v2036_v50  ;;  %v2104_v43 = vld [vmem:[%s2244_s13 + $0x128] ss:$28 sps:$4 sm:$0xff]  }
  0x31   : > { %1130 = vmatprep.mubr.bf16.mxu1 %v2029_v46  ;;  %1941 = vmatpush3.bf16.msra.mxu1 %v2059_v0  ;;  %v2110_v46 = vld [vmem:[%s2244_s13 + $0x19c] ss:$28 sps:$4 sm:$0xff]   ;;  %s1533_s13 = sshll.u32 %s2477_s17, 2 }
  0x32   : > { %1942 = vmatprep.subr.bf16.mxu1 %v2064_v5  ;;  %s2442_s9 = scalar_lea.vmem %s2475_s3, %s1533_s13 }
  0x33   : > { %1863 = vmatpush3.bf16.msra.mxu0 %v2039_v52 }
  0x34   : > { %1864 = vmatprep.subr.bf16.mxu0 %v2044_v54 }
  0x35   : > { %1943 = vmatpush3.bf16.msra.mxu1 %v2064_v5 }
  0x36   : > { %1034 = vmatmul.mubr.bf16.gmra.mrb[8].mxu0 %v2027_v48  ;;  %1944 = vmatprep.subr.bf16.mxu1 %v2069_v8 }
  0x37   : > { %1041 = vmatprep.mubr.bf16.mxu0 %v2033_v49  ;;  %1865 = vmatpush3.bf16.msra.mxu0 %v2047_v56  ;;  %v2386_v49 = vld [vmem:[%s2474_s2] ss:$0 sm:$0xff] }
  0x38   : > { %1131 = vmatmul.mubr.bf16.gmra.mrb[8].mxu1 %v2032_v51  ;;  %1866 = vmatprep.subr.bf16.mxu0 %v2053_v61 }
  0x39   : > { %1138 = vmatprep.mubr.bf16.mxu1 %v2037_v53  ;;  %1945 = vmatpush3.bf16.msra.mxu1 %v2069_v8 }
  0x3a   : > { %1946 = vmatprep.subr.bf16.mxu1 %v2074_v13 }
  0x3b   : > { %1867 = vmatpush3.bf16.msra.mxu0 %v2057_v63 }
  0x3c   : > { %1868 = vmatprep.subr.bf16.mxu0 %v2063_v4 }
  0x3d   : > { %1947 = vmatpush3.bf16.msra.mxu1 %v2074_v13 }
  0x3e   : > { %1042 = vmatmul.mubr.bf16.gmra.mrb[12].mxu0 %v2035_v55  ;;  %1948 = vmatprep.subr.bf16.mxu1 %v2079_v16 }
  0x3f   : > { %1049 = vmatprep.mubr.bf16.mxu0 %v2041_v57  ;;  %1869 = vmatpush3.bf16.msra.mxu0 %v2067_v7 }
  0x40   : > { %1139 = vmatmul.mubr.bf16.gmra.mrb[12].mxu1 %v2040_v59  ;;  %1870 = vmatprep.subr.bf16.mxu0 %v2073_v10 }
  0x41   : > { %1146 = vmatprep.mubr.bf16.mxu1 %v2045_v60  ;;  %1949 = vmatpush3.bf16.msra.mxu1 %v2079_v16 }
  0x42   : > { %1950 = vmatprep.subr.bf16.mxu1 %v2083_v19 }
  0x43   : > { %1871 = vmatpush3.bf16.msra.mxu0 %v2077_v14 }
  0x45   : > { %1951 = vmatpush3.bf16.msra.mxu1 %v2083_v19 }
  0x46   : > { %1050 = vmatmul.mubr.bf16.gmra.mrb[16].mxu0 %v2043_v1 }
  0x47   : > { %1057 = vmatprep.mubr.bf16.mxu0 %v2050_v3 }
  0x48   : > { %1147 = vmatmul.mubr.bf16.gmra.mrb[16].mxu1 %v2048_v2 }
  0x49   : > { %1154 = vmatprep.mubr.bf16.mxu1 %v2055_v6 }
  0x4e   : > { %1058 = vmatmul.mubr.bf16.gmra.mrb[20].mxu0 %v2052_v9 }
  0x4f   : > { %1065 = vmatprep.mubr.bf16.mxu0 %v2060_v12 }
  0x50   : > { %1155 = vmatmul.mubr.bf16.gmra.mrb[20].mxu1 %v2058_v11 }
  0x51   : > { %1162 = vmatprep.mubr.bf16.mxu1 %v2065_v15 }
  0x56   : > { %1066 = vmatmul.mubr.bf16.gmra.mrb[24].mxu0 %v2062_v17 }
  0x57   : > { %1073 = vmatprep.mubr.bf16.mxu0 %v2070_v18 }
  0x58   : > { %1163 = vmatmul.mubr.bf16.gmra.mrb[24].mxu1 %v2068_v20 }
  0x59   : > { %1170 = vmatprep.mubr.bf16.mxu1 %v2075_v21 }
  0x5e   : > { %1074 = vmatmul.mubr.bf16.gmra.mrb[28].mxu0 %v2072_v22 }
  0x5f   : > { %1211 = vmatprep.mubr.bf16.mxu0 %v2082_v23 }
  0x60   : > { %1171 = vmatmul.mubr.bf16.gmra.mrb[28].mxu1 %v2078_v24 }
  0x61   : > { %1952 = vmatprep.mubr.bf16.mxu1 %v2084_v25 }
  0x66   : > { %1212 = vmatmul.mubr.bf16.vlgmr.msra.gmra.mrb[32].mxu0 %v2080_v26 }
  0x67   : > { %1219 = vmatprep.mubr.bf16.mxu0 %v2086_v27 }
  0x68   : > { %1953 = vmatmul.mubr.bf16.vlgmr.msra.gmra.mrb[32].mxu1 %v2085_v28 }
  0x69   : > { %1956 = vmatprep.mubr.bf16.mxu1 %v2092_v29 }
  0x6e   : > { %1220 = vmatmul.mubr.bf16.gmra.mrb[36].mxu0 %v2088_v30 }
  0x6f   : > { %1227 = vmatprep.mubr.bf16.mxu0 %v2089_v31 }
  0x70   : > { %1957 = vmatmul.mubr.bf16.gmra.mrb[36].mxu1 %v2093_v32 }
  0x71   : > { %1960 = vmatprep.mubr.bf16.mxu1 %v2100_v33 }
  0x76   : > { %1228 = vmatmul.mubr.bf16.gmra.mrb[40].mxu0 %v2091_v34 }
  0x77   : > { %1235 = vmatprep.mubr.bf16.mxu0 %v2094_v35 }
  0x78   : > { %1961 = vmatmul.mubr.bf16.gmra.mrb[40].mxu1 %v2101_v36 }
  0x79   : > { %1964 = vmatprep.mubr.bf16.mxu1 %v2108_v37 }
  0x7e   : > { %1236 = vmatmul.mubr.bf16.gmra.mrb[44].mxu0 %v2096_v38 }
  0x7f   : > { %1243 = vmatprep.mubr.bf16.mxu0 %v2097_v39 }
  0x80   : > { %1965 = vmatmul.mubr.bf16.gmra.mrb[44].mxu1 %v2109_v40 }
  0x86   : > { %1244 = vmatmul.mubr.bf16.gmra.mrb[48].mxu0 %v2099_v41 }
  0x87   : > { %1251 = vmatprep.mubr.bf16.mxu0 %v2102_v42 }
  0x8e   : > { %1252 = vmatmul.mubr.bf16.gmra.mrb[52].mxu0 %v2104_v43 }
  0x8f   : > { %1259 = vmatprep.mubr.bf16.mxu0 %v2105_v44 }
  0x96   : > { %1260 = vmatmul.mubr.bf16.gmra.mrb[56].mxu0 %v2107_v45 }
  0x97   : > { %1267 = vmatprep.mubr.bf16.mxu0 %v2110_v46 }
  0x9e   : > { %1268 = vmatmul.mubr.bf16.gmra.mrb[60].mxu0 %v2112_v47 }
  0xf9   : > { %v1744_v48 = vpop.f32.mrb[0].mxu0 }
  0xfa   : > { %v1745_v50 = vpop.f32.mrb[1].mxu0 }
  0xfb   : > { %v1746_v51 = vadd.f32 %v1745_v50, %v1744_v48  ;;  %v1747_v52 = vpop.f32.mrb[2].mxu0  ;;  %v1808_v53 = vpop.f32.mrb[0].mxu1 }
  0xfc   : > { %v1748_v54 = vpop.f32.mrb[3].mxu0  ;;  %v1809_v57 = vpop.f32.mrb[1].mxu1 }
  0xfd   : > { %v1020_v55 = vadd.f32 %v1746_v51, %v2386_v49  ;;  %v1749_v56 = vadd.f32 %v1748_v54, %v1747_v52  ;;  %v1810_v58 = vadd.f32 %v1809_v57, %v1808_v53  ;;  %v1811_v59 = vpop.f32.mrb[2].mxu1 }
  0xfe   : > { %v1812_v61 = vpop.f32.mrb[3].mxu1 }
  0xff   : > { %v1023_v60 = vadd.f32 %v1749_v56, %v2386_v49  ;;  %v2390_v62 = vadd.f32 %v1810_v58, %v1020_v55  ;;  %v1813_v63 = vadd.f32 %v1812_v61, %v1811_v59 }
 0x101   : > { %v1750_v0 = vpop.f32.mrb[4].mxu0  ;;  %v2392_v1 = vadd.f32 %v1813_v63, %v1023_v60 }
 0x102   : > { %v1751_v2 = vpop.f32.mrb[5].mxu0 }
 0x103   : > { %v1752_v3 = vadd.f32 %v1751_v2, %v1750_v0  ;;  %v1753_v4 = vpop.f32.mrb[6].mxu0  ;;  %v1814_v5 = vpop.f32.mrb[4].mxu1 }
 0x104   : > { %v1754_v6 = vpop.f32.mrb[7].mxu0  ;;  %v1815_v9 = vpop.f32.mrb[5].mxu1 }
 0x105   : > { %v1028_v7 = vadd.f32 %v1752_v3, %v2386_v49  ;;  %v1755_v8 = vadd.f32 %v1754_v6, %v1753_v4  ;;  %v1816_v10 = vadd.f32 %v1815_v9, %v1814_v5  ;;  %v1817_v11 = vpop.f32.mrb[6].mxu1 }
 0x106   : > { %v1818_v13 = vpop.f32.mrb[7].mxu1 }
 0x107   : > { %v1031_v12 = vadd.f32 %v1755_v8, %v2386_v49  ;;  %v2396_v14 = vadd.f32 %v1816_v10, %v1028_v7  ;;  %v1819_v15 = vadd.f32 %v1818_v13, %v1817_v11 }
 0x109   : > { %v1756_v16 = vpop.f32.mrb[8].mxu0  ;;  %v2398_v17 = vadd.f32 %v1819_v15, %v1031_v12 }
 0x10a   : > { %v1757_v18 = vpop.f32.mrb[9].mxu0 }
 0x10b   : > { %v1758_v19 = vadd.f32 %v1757_v18, %v1756_v16  ;;  %v1759_v20 = vpop.f32.mrb[10].mxu0  ;;  %v1820_v21 = vpop.f32.mrb[8].mxu1 }
 0x10c   : > { %v1760_v22 = vpop.f32.mrb[11].mxu0  ;;  %v1821_v25 = vpop.f32.mrb[9].mxu1 }
 0x10d   : > { %v1036_v23 = vadd.f32 %v1758_v19, %v2386_v49  ;;  %v1761_v24 = vadd.f32 %v1760_v22, %v1759_v20  ;;  %v1822_v26 = vadd.f32 %v1821_v25, %v1820_v21  ;;  %v1823_v27 = vpop.f32.mrb[10].mxu1 }
 0x10e   : > { %v1824_v29 = vpop.f32.mrb[11].mxu1 }
 0x10f   : > { %v1039_v28 = vadd.f32 %v1761_v24, %v2386_v49  ;;  %v2402_v30 = vadd.f32 %v1822_v26, %v1036_v23  ;;  %v1825_v31 = vadd.f32 %v1824_v29, %v1823_v27 }
 0x111   : > { %v1762_v32 = vpop.f32.mrb[12].mxu0  ;;  %v2404_v33 = vadd.f32 %v1825_v31, %v1039_v28 }
 0x112   : > { %v1763_v34 = vpop.f32.mrb[13].mxu0 }
 0x113   : > { %v1764_v35 = vadd.f32 %v1763_v34, %v1762_v32  ;;  %v1765_v36 = vpop.f32.mrb[14].mxu0  ;;  %v1826_v37 = vpop.f32.mrb[12].mxu1 }
 0x114   : > { %v1766_v38 = vpop.f32.mrb[15].mxu0  ;;  %v1827_v41 = vpop.f32.mrb[13].mxu1 }
 0x115   : > { %v1044_v39 = vadd.f32 %v1764_v35, %v2386_v49  ;;  %v1767_v40 = vadd.f32 %v1766_v38, %v1765_v36  ;;  %v1828_v42 = vadd.f32 %v1827_v41, %v1826_v37  ;;  %v1829_v43 = vpop.f32.mrb[14].mxu1 }
 0x116   : > { %v1830_v45 = vpop.f32.mrb[15].mxu1 }
 0x117   : > { %v1047_v44 = vadd.f32 %v1767_v40, %v2386_v49  ;;  %v2408_v46 = vadd.f32 %v1828_v42, %v1044_v39  ;;  %v1831_v47 = vadd.f32 %v1830_v45, %v1829_v43 }
 0x119   : > { %v1768_v48 = vpop.f32.mrb[16].mxu0  ;;  %v2410_v50 = vadd.f32 %v1831_v47, %v1047_v44 }
 0x11a   : > { %v1769_v51 = vpop.f32.mrb[17].mxu0 }
 0x11b   : > { %v1770_v52 = vadd.f32 %v1769_v51, %v1768_v48  ;;  %v1771_v53 = vpop.f32.mrb[18].mxu0  ;;  %v1832_v54 = vpop.f32.mrb[16].mxu1 }
 0x11c   : > { %v1772_v55 = vpop.f32.mrb[19].mxu0  ;;  %v1833_v58 = vpop.f32.mrb[17].mxu1 }
 0x11d   : > { %v1052_v56 = vadd.f32 %v1770_v52, %v2386_v49  ;;  %v1773_v57 = vadd.f32 %v1772_v55, %v1771_v53  ;;  %v1834_v59 = vadd.f32 %v1833_v58, %v1832_v54  ;;  %v1835_v60 = vpop.f32.mrb[18].mxu1 }
 0x11e   : > { %v1836_v63 = vpop.f32.mrb[19].mxu1 }
 0x11f   : > { %v1055_v61 = vadd.f32 %v1773_v57, %v2386_v49  ;;  %v2414_v0 = vadd.f32 %v1834_v59, %v1052_v56  ;;  %v1837_v2 = vadd.f32 %v1836_v63, %v1835_v60 }
 0x121   : > { %v1774_v3 = vpop.f32.mrb[20].mxu0  ;;  %v2416_v4 = vadd.f32 %v1837_v2, %v1055_v61 }
 0x122   : > { %v1775_v5 = vpop.f32.mrb[21].mxu0 }
 0x123   : > { %v1776_v6 = vadd.f32 %v1775_v5, %v1774_v3  ;;  %v1777_v7 = vpop.f32.mrb[22].mxu0  ;;  %v1838_v8 = vpop.f32.mrb[20].mxu1 }
 0x124   : > { %v1778_v9 = vpop.f32.mrb[23].mxu0  ;;  %v1839_v12 = vpop.f32.mrb[21].mxu1 }
 0x125   : > { %v1060_v10 = vadd.f32 %v1776_v6, %v2386_v49  ;;  %v1779_v11 = vadd.f32 %v1778_v9, %v1777_v7  ;;  %v1840_v13 = vadd.f32 %v1839_v12, %v1838_v8  ;;  %v1841_v15 = vpop.f32.mrb[22].mxu1 }
 0x126   : > { %v1842_v18 = vpop.f32.mrb[23].mxu1 }
 0x127   : > { %v1063_v16 = vadd.f32 %v1779_v11, %v2386_v49  ;;  %v2420_v19 = vadd.f32 %v1840_v13, %v1060_v10  ;;  %v1843_v20 = vadd.f32 %v1842_v18, %v1841_v15 }
 0x129   : > { %v1780_v21 = vpop.f32.mrb[24].mxu0  ;;  %v2422_v22 = vadd.f32 %v1843_v20, %v1063_v16 }
 0x12a   : > { %v1781_v23 = vpop.f32.mrb[25].mxu0 }
 0x12b   : > { %v1782_v24 = vadd.f32 %v1781_v23, %v1780_v21  ;;  %v1783_v25 = vpop.f32.mrb[26].mxu0  ;;  %v1844_v26 = vpop.f32.mrb[24].mxu1 }
 0x12c   : > { %v1784_v27 = vpop.f32.mrb[27].mxu0  ;;  %v1845_v31 = vpop.f32.mrb[25].mxu1 }
 0x12d   : > { %v1068_v28 = vadd.f32 %v1782_v24, %v2386_v49  ;;  %v1785_v29 = vadd.f32 %v1784_v27, %v1783_v25  ;;  %v1846_v32 = vadd.f32 %v1845_v31, %v1844_v26  ;;  %v1847_v34 = vpop.f32.mrb[26].mxu1 }
 0x12e   : > { %v1848_v36 = vpop.f32.mrb[27].mxu1 }
 0x12f   : > { %v1071_v35 = vadd.f32 %v1785_v29, %v2386_v49  ;;  %v2426_v37 = vadd.f32 %v1846_v32, %v1068_v28  ;;  %v1849_v38 = vadd.f32 %v1848_v36, %v1847_v34 }
 0x131   : > { %v1786_v39 = vpop.f32.mrb[28].mxu0  ;;  %v2428_v40 = vadd.f32 %v1849_v38, %v1071_v35 }
 0x132   : > { %v1787_v41 = vpop.f32.mrb[29].mxu0 }
 0x133   : > { %v1788_v42 = vadd.f32 %v1787_v41, %v1786_v39  ;;  %v1789_v43 = vpop.f32.mrb[30].mxu0  ;;  %v1850_v44 = vpop.f32.mrb[28].mxu1 }
 0x134   : > { %v1790_v45 = vpop.f32.mrb[31].mxu0  ;;  %v1851_v51 = vpop.f32.mrb[29].mxu1 }
 0x135   : > { %v1076_v47 = vadd.f32 %v1788_v42, %v2386_v49  ;;  %v1791_v48 = vadd.f32 %v1790_v45, %v1789_v43  ;;  %v1852_v52 = vadd.f32 %v1851_v51, %v1850_v44  ;;  %v1853_v53 = vpop.f32.mrb[30].mxu1 }
 0x136   : > { %v1854_v55 = vpop.f32.mrb[31].mxu1 }
 0x137   : > { %v1079_v54 = vadd.f32 %v1791_v48, %v2386_v49  ;;  %v2432_v56 = vadd.f32 %v1852_v52, %v1076_v47  ;;  %v1855_v57 = vadd.f32 %v1854_v55, %v1853_v53 }
 0x139   : > { %v1872_v58 = vpop.f32.mrb[32].mxu0  ;;  %v2434_v59 = vadd.f32 %v1855_v57, %v1079_v54 }
 0x13a   : > { %v1873_v60 = vpop.f32.mrb[33].mxu0 }
 0x13b   : > { %v1874_v61 = vadd.f32 %v1873_v60, %v1872_v58  ;;  %v1875_v63 = vpop.f32.mrb[34].mxu0  ;;  %v1954_v3 = vpop.f32.mrb[32].mxu1 }
 0x13c   : > { %v1876_v2 = vpop.f32.mrb[35].mxu0  ;;  %v1310_v7 = vpop.f32.mrb[33].mxu1 }
 0x13d   : > { %v1877_v5 = vadd.f32 %v1876_v2, %v1875_v63  ;;  %v1214_v6 = vadd.f32 %v1874_v61, %v2390_v62  ;;  %v1955_v8 = vpop.f32.mrb[34].mxu1 }
 0x13e   : > { %v1313_v10 = vpop.f32.mrb[35].mxu1 }
 0x13f   : > { %v1311_v9 = vadd.f32 %v1310_v7, %v1214_v6  ;;  %v1217_v49 = vadd.f32 %v1877_v5, %v2392_v1 }
 0x141   : > { %v1314_v11 = vadd.f32 %v1313_v10, %v1217_v49  ;;  %v1878_v12 = vpop.f32.mrb[36].mxu0  ;;  %v1373_v15 = vmax.f32 %v1311_v9, 0.0 }
 0x142   : > { %v1879_v13 = vpop.f32.mrb[37].mxu0 }
 0x143   : > { %v1374_v16 = vmax.f32 %v1314_v11, 0.0  ;;  %v1880_v18 = vadd.f32 %v1879_v13, %v1878_v12  ;;  %v1881_v20 = vpop.f32.mrb[38].mxu0  ;;  %v1958_v21 = vpop.f32.mrb[36].mxu1 }
 0x144   : > { %v1882_v62 = vpop.f32.mrb[39].mxu0  ;;  %v1326_v25 = vpop.f32.mrb[37].mxu1 }
 0x145   : > { %v1684_v23 = vpack.c.bf16 %v1374_v16, %v1373_v15  ;;  %v1222_v1 = vadd.f32 %v1880_v18, %v2396_v14  ;;  %v1883_v24 = vadd.f32 %v1882_v62, %v1881_v20  ;;  %v1959_v26 = vpop.f32.mrb[38].mxu1 }
 0x146   : > { %v1329_v29 = vpop.f32.mrb[39].mxu1 }
 0x147   : > { %1685 = vst [vmem:[%s2442_s9] sm:$0xff] %v1684_v23   ;;  %v1319_v27 = vadd.f32 %v1954_v3, %v1222_v1  ;;  %v1225_v28 = vadd.f32 %v1883_v24, %v2398_v17 }
 0x149   : > { %v1322_v31 = vadd.f32 %v1955_v8, %v1225_v28  ;;  %v1884_v32 = vpop.f32.mrb[40].mxu0  ;;  %v1375_v35 = vmax.f32 %v1319_v27, 0.0 }
 0x14a   : > { %v1885_v34 = vpop.f32.mrb[41].mxu0 }
 0x14b   : > { %v1376_v36 = vmax.f32 %v1322_v31, 0.0  ;;  %v1886_v38 = vadd.f32 %v1885_v34, %v1884_v32  ;;  %v1887_v39 = vpop.f32.mrb[42].mxu0  ;;  %v1962_v42 = vpop.f32.mrb[40].mxu1 }
 0x14c   : > { %v1888_v41 = vpop.f32.mrb[43].mxu0  ;;  %v1342_v45 = vpop.f32.mrb[41].mxu1 }
 0x14d   : > { %v1689_v43 = vpack.c.bf16 %v1376_v36, %v1375_v35  ;;  %v1889_v14 = vadd.f32 %v1888_v41, %v1887_v39  ;;  %v1230_v44 = vadd.f32 %v1886_v38, %v2402_v30  ;;  %v1963_v47 = vpop.f32.mrb[42].mxu1 }
 0x14e   : > { %v1345_v51 = vpop.f32.mrb[43].mxu1 }
 0x14f   : > { %1721 = vst [vmem:[%s2442_s9 + $0x8] sm:$0xff] %v1689_v43   ;;  %v1327_v48 = vadd.f32 %v1326_v25, %v1230_v44  ;;  %v1233_v17 = vadd.f32 %v1889_v14, %v2404_v33 }
 0x151   : > { %v1330_v52 = vadd.f32 %v1329_v29, %v1233_v17  ;;  %v1890_v53 = vpop.f32.mrb[44].mxu0  ;;  %v1377_v55 = vmax.f32 %v1327_v48, 0.0 }
 0x152   : > { %v1891_v54 = vpop.f32.mrb[45].mxu0 }
 0x153   : > { %v1378_v57 = vmax.f32 %v1330_v52, 0.0  ;;  %v1892_v58 = vadd.f32 %v1891_v54, %v1890_v53  ;;  %v1893_v60 = vpop.f32.mrb[46].mxu0  ;;  %v2450_v63 = vpop.f32.mrb[44].mxu1 }
 0x154   : > { %v1894_v61 = vpop.f32.mrb[47].mxu0  ;;  %v1358_v5 = vpop.f32.mrb[45].mxu1 }
 0x155   : > { %v1694_v2 = vpack.c.bf16 %v1378_v57, %v1377_v55  ;;  %v1238_v30 = vadd.f32 %v1892_v58, %v2408_v46  ;;  %v1895_v3 = vadd.f32 %v1894_v61, %v1893_v60  ;;  %v1967_v6 = vpop.f32.mrb[46].mxu1 }
 0x156   : > { %v1361_v8 = vpop.f32.mrb[47].mxu1 }
 0x157   : > { %1722 = vst [vmem:[%s2442_s9 + $0x10] sm:$0xff] %v1694_v2   ;;  %v1335_v33 = vadd.f32 %v1958_v21, %v1238_v30  ;;  %v1241_v7 = vadd.f32 %v1895_v3, %v2410_v50 }
 0x159   : > { %v1338_v9 = vadd.f32 %v1959_v26, %v1241_v7  ;;  %v1896_v49 = vpop.f32.mrb[48].mxu0  ;;  %v1379_v11 = vmax.f32 %v1335_v33, 0.0 }
 0x15a   : > { %v1897_v10 = vpop.f32.mrb[49].mxu0 }
 0x15b   : > { %v1380_v12 = vmax.f32 %v1338_v9, 0.0  ;;  %v1898_v13 = vadd.f32 %v1897_v10, %v1896_v49  ;;  %v1899_v15 = vpop.f32.mrb[50].mxu0 }
 0x15c   : > { %v1900_v16 = vpop.f32.mrb[51].mxu0 }
 0x15d   : > { %v1699_v18 = vpack.c.bf16 %v1380_v12, %v1379_v11  ;;  %v1901_v20 = vadd.f32 %v1900_v16, %v1899_v15  ;;  %v1246_v46 = vadd.f32 %v1898_v13, %v2414_v0 }
 0x15f   : > { %1723 = vst [vmem:[%s2442_s9 + $0x18] sm:$0xff] %v1699_v18   ;;  %v1343_v62 = vadd.f32 %v1342_v45, %v1246_v46  ;;  %v1249_v21 = vadd.f32 %v1901_v20, %v2416_v4 }
 0x161   : > { %v1346_v23 = vadd.f32 %v1345_v51, %v1249_v21  ;;  %v1902_v50 = vpop.f32.mrb[52].mxu0  ;;  %v1381_v24 = vmax.f32 %v1343_v62, 0.0 }
 0x162   : > { %v1903_v1 = vpop.f32.mrb[53].mxu0 }
 0x163   : > { %v1382_v25 = vmax.f32 %v1346_v23, 0.0  ;;  %v1904_v26 = vadd.f32 %v1903_v1, %v1902_v50  ;;  %v1905_v27 = vpop.f32.mrb[54].mxu0 }
 0x164   : > { %v1906_v28 = vpop.f32.mrb[55].mxu0 }
 0x165   : > { %v1704_v29 = vpack.c.bf16 %v1382_v25, %v1381_v24  ;;  %v1254_v31 = vadd.f32 %v1904_v26, %v2420_v19  ;;  %v1907_v32 = vadd.f32 %v1906_v28, %v1905_v27 }
 0x167   : > { %1724 = vst [vmem:[%s2442_s9 + $0x20] sm:$0xff] %v1704_v29   ;;  %v1351_v34 = vadd.f32 %v1962_v42, %v1254_v31  ;;  %v1257_v0 = vadd.f32 %v1907_v32, %v2422_v22 }
 0x169   : > { %v1354_v35 = vadd.f32 %v1963_v47, %v1257_v0  ;;  %v1908_v36 = vpop.f32.mrb[56].mxu0  ;;  %v1383_v38 = vmax.f32 %v1351_v34, 0.0 }
 0x16a   : > { %v1909_v4 = vpop.f32.mrb[57].mxu0 }
 0x16b   : > { %v1384_v39 = vmax.f32 %v1354_v35, 0.0  ;;  %v1910_v41 = vadd.f32 %v1909_v4, %v1908_v36  ;;  %v1911_v43 = vpop.f32.mrb[58].mxu0 }
 0x16c   : > { %v1912_v14 = vpop.f32.mrb[59].mxu0 }
 0x16d   : > { %v1709_v44 = vpack.c.bf16 %v1384_v39, %v1383_v38  ;;  %v1913_v45 = vadd.f32 %v1912_v14, %v1911_v43  ;;  %v1262_v48 = vadd.f32 %v1910_v41, %v2426_v37 }
 0x16f   : > { %1725 = vst [vmem:[%s2442_s9 + $0x28] sm:$0xff] %v1709_v44   ;;  %v1359_v19 = vadd.f32 %v1358_v5, %v1262_v48  ;;  %v1265_v17 = vadd.f32 %v1913_v45, %v2428_v40 }
 0x171   : > { %v1362_v42 = vadd.f32 %v1361_v8, %v1265_v17  ;;  %v1914_v51 = vpop.f32.mrb[60].mxu0  ;;  %v1385_v47 = vmax.f32 %v1359_v19, 0.0 }
 0x172   : > { %v1915_v22 = vpop.f32.mrb[61].mxu0 }
 0x173   : > { %v1386_v52 = vmax.f32 %v1362_v42, 0.0  ;;  %v1916_v53 = vadd.f32 %v1915_v22, %v1914_v51  ;;  %v1917_v54 = vpop.f32.mrb[62].mxu0 }
 0x174   : > { %v1918_v55 = vpop.f32.mrb[63].mxu0 }
 0x175   : > { %v1714_v57 = vpack.c.bf16 %v1386_v52, %v1385_v47  ;;  %v1270_v58 = vadd.f32 %v1916_v53, %v2432_v56  ;;  %v1919_v60 = vadd.f32 %v1918_v55, %v1917_v54 }
 0x177   : > { %1726 = vst [vmem:[%s2442_s9 + $0x30] sm:$0xff] %v1714_v57   ;;  %v1367_v37 = vadd.f32 %v2450_v63, %v1270_v58  ;;  %v1273_v61 = vadd.f32 %v1919_v60, %v2434_v59 }
 0x179   : > { %v1370_v2 = vadd.f32 %v1967_v6, %v1273_v61  ;;  %v1387_v40 = vmax.f32 %v1367_v37, 0.0 }
 0x17b   : > { %v1388_v30 = vmax.f32 %v1370_v2, 0.0 }
 0x17d   : > { %v1719_v3 = vpack.c.bf16 %v1388_v30, %v1387_v40 }
 0x17f   : > { %1727 = vst [vmem:[%s2442_s9 + $0x38] sm:$0xff] %v1719_v3  }
 0x180 PF: > { %s13_s12 = sadd.s32 1, %s2119_s12  }
 0x181   : > { %p10_p4 = scmp.ge.s32.totalorder %s13_s12, 5  }
 0x183   :  { %12 = sbr.rel (!%p10_p4) target bundleno = 1 (0x1), region = 62 }

// kernel: ctiny_forward.5
= control target key start
LH: loop header
LB: loop body
LE: loop exit
PB: predicated region body
PF: predicated region fallthrough
CT: control target
= control target key end

     0   :  { %s1552_s18 = smov 0   ;;  %s1554_s19 = smov 0   ;;  %s1719_s0 = inlined_call_operand.vmem [shape: bf16[16,11264], index: 0, kind: input, shape index: {}]   ;;  %s1720_s1 = inlined_call_operand.vmem [shape: bf16[11264,128], index: 1, kind: input, shape index: {}]   ;;  %s1721_s2 = inlined_call_operand.vmem [shape: f32[1,128], index: 2, kind: input, shape index: {}]   ;;  %s1722_s3 = inlined_call_operand.vmem [shape: bf16[128,128], index: 3, kind: input, shape index: {}]   ;;  %s1723_s4 = inlined_call_operand.vmem [shape: f32[1,128], index: 4, kind: input, shape index: {}]   ;;  %s1724_s5 = inlined_call_operand.vmem [shape: f32[16,128], index: 5, kind: output, shape index: {}]  }
   0x1   :  { %s1556_s20 = smov 0  }
   0x2 LB: > { %s1568_s21 = sadd.s32 4294967295, %s1517_s20   ;;  %s1571_s22 = sadd.s32 1, %s1517_s20   ;;  %s1517_s20 = sphi %s1556_s20, %s1727_s20   ;;  %s1513_s19 = sphi %s1554_s19, %s1726_s19   ;;  %s1509_s18 = sphi %s1552_s18, %s1725_s18  }
   0x3   : > { %s19_s23 = ssub.s32 %s1517_s20, %s1571_s22  ;;  %s22_s24 = sadd.s32 1, %s1513_s19 }
   0x4   : > { %p20_p0 = scmp.eq.s32.totalorder %s19_s23, 0  ;;  %p29_p1 = scmp.ne.s32.totalorder %s1513_s19, %s1509_s18 }
   0x5   : > { %p30_p2 = scmp.eq.s32.totalorder %s1517_s20, 0  ;;  %p1184_p4 = scmp.ge.s32.totalorder %s1517_s20, 11 }
   0x6   : > { %s1580_s25 = scalar_select %p20_p0, %s1513_s19, %s22_s24  }
   0x7   : > { %p31_p3 = por %p30_p2, %p29_p1  ;;  %174 = sbr.rel (%p1184_p4) target bundleno = 22 (0x16), region = 28 }
   0xe   : > { %177 = sbr.rel (!%p31_p3) target bundleno = 22 (0x16), region = 32  ;;  %s179_s26 = sand.u32 (%p31_p3), 1, %s1513_s19  }
   0xf   : > { %s1278_s27 = sshll.u32 (%p31_p3), %s1517_s20, 5  ;;  %s1185_s28 = sshll.u32 (%p31_p3), %s179_s26, 6 }
  0x10   : > { %s184_s6 = scalar_lea.vmem (%p31_p3), %s1719_s0, %s1278_s27  ;;  %s181_s7 = scalar_lea.vmem (%p31_p3), [#allocation3], %s1185_s28 }
  0x11   : > { %v197_v0 = vld [vmem:[%s184_s6] sm:$0xff] (%p31_p3)  ;;  %v199_v1 = vld [vmem:[%s184_s6 + $0x8] sm:$0xff] (%p31_p3)  ;;  %v201_v2 = vld [vmem:[%s184_s6 + $0x10] sm:$0xff] (%p31_p3) }
  0x12   : > { %198 = vst [vmem:[%s181_s7] sm:$0xff] (%p31_p3), %v197_v0  ;;  %200 = vst [vmem:[%s181_s7 + $0x8] sm:$0xff] (%p31_p3), %v199_v1  ;;  %v203_v3 = vld [vmem:[%s184_s6 + $0x18] sm:$0xff] (%p31_p3)  ;;  %v205_v4 = vld [vmem:[%s184_s6 + $0x160] sm:$0xff] (%p31_p3) }
  0x13   : > { %202 = vst [vmem:[%s181_s7 + $0x10] sm:$0xff] (%p31_p3), %v201_v2  ;;  %v207_v5 = vld [vmem:[%s184_s6 + $0x168] sm:$0xff] (%p31_p3)  ;;  %204 = vst [vmem:[%s181_s7 + $0x18] sm:$0xff] (%p31_p3), %v203_v3  ;;  %v209_v6 = vld [vmem:[%s184_s6 + $0x170] sm:$0xff] (%p31_p3) }
  0x14   : > { %206 = vst [vmem:[%s181_s7 + $0x20] sm:$0xff] (%p31_p3), %v205_v4  ;;  %208 = vst [vmem:[%s181_s7 + $0x28] sm:$0xff] (%p31_p3), %v207_v5  ;;  %v211_v7 = vld [vmem:[%s184_s6 + $0x178] sm:$0xff] (%p31_p3) }
  0x15   : > { %210 = vst [vmem:[%s181_s7 + $0x30] sm:$0xff] %v209_v6  ;;  %212 = vst [vmem:[%s181_s7 + $0x38] sm:$0xff] %v211_v7 }
  0x16 PF: > { %p1188_p5 = scmp.ge.s32.totalorder %s1517_s20, 1  ;;  %p226_p6 = scmp.lt.s32.totalorder %s1517_s20, 12 }
  0x18   : > { %p227_p7 = pnand %p1188_p5, %p226_p6 }
  0x19   : > { %s233_s8 = sand.u32 (!%p227_p7), 1, %s1509_s18   ;;  %s1190_s9 = sshll.u32 (!%p227_p7), %s1568_s21, 7 }
  0x1a   : > { %230 = sbr.rel (%p227_p7) target bundleno = 560 (0x230), region = 59  ;;  %s1189_s10 = sshll.u32 (!%p227_p7), %s233_s8, 6 }
  0x1b   : > { %p262_p8 = scmp.lt.s32.totalorder (!%p227_p7), %s1190_s9, 1407  ;;  %s1597_s15 = scalar_lea.vmem (!%p227_p7), [#allocation3], %s1189_s10 }
  0x1c   : > { %p1192_p9 = scmp.ne.s32.totalorder (!%p227_p7), %s1568_s21, 0 }
  0x21   : > { %s1729_s9 = smov (!%p262_p8, %s1190_s9), 1407  ;;  %271 = sbr.rel (%p1192_p9) target bundleno = 40 (0x28), region = 67 }
  0x22   : > { %s1191_s11 = sshll.u32 %s1729_s9, 2  ;;  %v1519_v8 = vmov (!%p1192_p9), 0.0  }
  0x23   : > { %s1595_s14 = scalar_lea.vmem %s1720_s1, %s1191_s11  ;;  %272 = vst [vmem:[#allocation2] sm:$0xff] (!%p1192_p9), %v1519_v8  ;;  %273 = vst [vmem:[#allocation2 + $0x8] sm:$0xff] (!%p1192_p9), %v1519_v8 }
  0x28 PF: > { %v1423_v9 = vld [vmem:[%s1595_s14 + $0x40] sm:$0xff]   ;;  %v1427_v13 = vld [vmem:[%s1595_s14 + $0x48] sm:$0xff]   ;;  %v1431_v17 = vld [vmem:[%s1595_s14 + $0x50] sm:$0xff]   ;;  %p1265_p10 = scmp.ne.s32.totalorder %s1568_s21, 10 }
  0x29   : > { %v1424_v10 = vld [vmem:[%s1595_s14 + $0xc0] sm:$0xff]   ;;  %1279 = vmatprep.subr.bf16.mxu0 %v1423_v9  ;;  %v1428_v14 = vld [vmem:[%s1595_s14 + $0xc8] sm:$0xff]   ;;  %v1432_v18 = vld [vmem:[%s1595_s14 + $0xd0] sm:$0xff]   ;;  %vm1521_vm0 = vmmov (!%p1265_p10), 0  }
  0x2a   : > { %v1425_v11 = vld [vmem:[%s1595_s14] sm:$0xff]   ;;  %1301 = vmatprep.subr.bf16.mxu1 %v1424_v10  ;;  %v1429_v15 = vld [vmem:[%s1595_s14 + $0x8] sm:$0xff]   ;;  %v1433_v19 = vld [vmem:[%s1595_s14 + $0x10] sm:$0xff]  }
  0x2b   : > { %v1426_v12 = vld [vmem:[%s1595_s14 + $0x80] sm:$0xff]   ;;  %1280 = vmatpush3.bf16.msra.mxu0 %v1425_v11  ;;  %v1430_v16 = vld [vmem:[%s1595_s14 + $0x88] sm:$0xff]   ;;  %v1434_v20 = vld [vmem:[%s1595_s14 + $0x90] sm:$0xff]  }
  0x2c   : > { %1302 = vmatpush3.bf16.msra.mxu1 %v1426_v12  ;;  %1281 = vmatprep.subr.bf16.mxu0 %v1427_v13  ;;  %v1435_v21 = vld [vmem:[%s1595_s14 + $0x58] sm:$0xff]   ;;  %v1439_v25 = vld [vmem:[%s1595_s14 + $0x60] sm:$0xff]   ;;  %v1443_v29 = vld [vmem:[%s1595_s14 + $0x68] sm:$0xff]  }
  0x2d   : > { %1303 = vmatprep.subr.bf16.mxu1 %v1428_v14  ;;  %v1436_v22 = vld [vmem:[%s1595_s14 + $0xd8] sm:$0xff]   ;;  %v1440_v26 = vld [vmem:[%s1595_s14 + $0xe0] sm:$0xff]   ;;  %v1444_v30 = vld [vmem:[%s1595_s14 + $0xe8] sm:$0xff]  }
  0x2e   : > { %v1437_v23 = vld [vmem:[%s1595_s14 + $0x18] sm:$0xff]   ;;  %v1441_v27 = vld [vmem:[%s1595_s14 + $0x20] sm:$0xff]   ;;  %v1445_v31 = vld [vmem:[%s1595_s14 + $0x28] sm:$0xff]  }
  0x2f   : > { %1282 = vmatpush3.bf16.msra.mxu0 %v1429_v15  ;;  %v1438_v24 = vld [vmem:[%s1595_s14 + $0x98] sm:$0xff]   ;;  %v1442_v28 = vld [vmem:[%s1595_s14 + $0xa0] sm:$0xff]   ;;  %v1446_v32 = vld [vmem:[%s1595_s14 + $0xa8] sm:$0xff]  }
  0x30   : > { %1304 = vmatpush3.bf16.msra.mxu1 %v1430_v16  ;;  %1283 = vmatprep.subr.bf16.mxu0 %v1431_v17  ;;  %v1447_v33 = vld [vmem:[%s1595_s14 + $0x70] sm:$0xff]   ;;  %v1451_v37 = vld [vmem:[%s1595_s14 + $0x78] sm:$0xff]   ;;  %v1455_v49 = vld [vmem:[%s1595_s14 + $0x140] sm:$0xff]  }
  0x31   : > { %1305 = vmatprep.subr.bf16.mxu1 %v1432_v18  ;;  %v1448_v34 = vld [vmem:[%s1595_s14 + $0xf0] sm:$0xff]   ;;  %v1452_v38 = vld [vmem:[%s1595_s14 + $0xf8] sm:$0xff]   ;;  %v1456_v50 = vld [vmem:[%s1595_s14 + $0x1c0] sm:$0xff]  }
  0x32   : > { %v1449_v35 = vld [vmem:[%s1595_s14 + $0x30] sm:$0xff]   ;;  %v1453_v39 = vld [vmem:[%s1595_s14 + $0x38] sm:$0xff]   ;;  %v1457_v51 = vld [vmem:[%s1595_s14 + $0x100] sm:$0xff]  }
  0x33   : > { %1284 = vmatpush3.bf16.msra.mxu0 %v1433_v19  ;;  %v1450_v36 = vld [vmem:[%s1595_s14 + $0xb0] sm:$0xff]   ;;  %v1454_v40 = vld [vmem:[%s1595_s14 + $0xb8] sm:$0xff]   ;;  %v1458_v52 = vld [vmem:[%s1595_s14 + $0x180] sm:$0xff]  }
  0x34   : > { %1306 = vmatpush3.bf16.msra.mxu1 %v1434_v20  ;;  %1285 = vmatprep.subr.bf16.mxu0 %v1435_v21  ;;  %v276_v41 = vld [vmem:[%s1597_s15] sm:$0xff]  ;;  %v277_v43 = vld [vmem:[%s1597_s15 + $0x8] sm:$0xff]  ;;  %v1459_v53 = vld [vmem:[%s1595_s14 + $0x148] sm:$0xff]  }
  0x35   : > { %1307 = vmatprep.subr.bf16.mxu1 %v1436_v22  ;;  %v280_v42 = vld [vmem:[%s1597_s15 + $0x20] sm:$0xff]  ;;  %v281_v46 = vld [vmem:[%s1597_s15 + $0x28] sm:$0xff]  ;;  %v1460_v54 = vld [vmem:[%s1595_s14 + $0x1c8] sm:$0xff]  }
  0x36   : > { %v1193_v44 = vcombine.low %v276_v41, %v280_v42  ;;  %v1194_v45 = vcombine.high %v276_v41, %v280_v42  ;;  %v1195_v47 = vcombine.low %v277_v43, %v281_v46  ;;  %v1196_v48 = vcombine.high %v277_v43, %v281_v46  ;;  %v1461_v55 = vld [vmem:[%s1595_s14 + $0x108] sm:$0xff]   ;;  %v1463_v57 = vld [vmem:[%s1595_s14 + $0x150] sm:$0xff]   ;;  %v1467_v61 = vld [vmem:[%s1595_s14 + $0x158] sm:$0xff]  }
  0x37   : > { %1286 = vmatpush3.bf16.msra.mxu0 %v1437_v23  ;;  %v1462_v56 = vld [vmem:[%s1595_s14 + $0x188] sm:$0xff]   ;;  %v1464_v58 = vld [vmem:[%s1595_s14 + $0x1d0] sm:$0xff]   ;;  %v1468_v62 = vld [vmem:[%s1595_s14 + $0x1d8] sm:$0xff]  }
  0x38   : > { %1308 = vmatpush3.bf16.msra.mxu1 %v1438_v24  ;;  %1287 = vmatprep.subr.bf16.mxu0 %v1439_v25  ;;  %v1465_v59 = vld [vmem:[%s1595_s14 + $0x110] sm:$0xff]   ;;  %v1469_v63 = vld [vmem:[%s1595_s14 + $0x118] sm:$0xff]   ;;  %v1471_v1 = vld [vmem:[%s1595_s14 + $0x160] sm:$0xff]  }
  0x39   : > { %1309 = vmatprep.subr.bf16.mxu1 %v1440_v26  ;;  %868 = vmatprep.mubr.bf16.mxu0 %v1194_v45  ;;  %v1466_v60 = vld [vmem:[%s1595_s14 + $0x190] sm:$0xff]   ;;  %v1470_v0 = vld [vmem:[%s1595_s14 + $0x198] sm:$0xff]   ;;  %v1472_v2 = vld [vmem:[%s1595_s14 + $0x1e0] sm:$0xff]  }
  0x3a   : > { %909 = vmatprep.mubr.bf16.mxu1 %v1196_v48  ;;  %v1473_v3 = vld [vmem:[%s1595_s14 + $0x120] sm:$0xff]   ;;  %v1475_v5 = vld [vmem:[%s1595_s14 + $0x168] sm:$0xff]   ;;  %v1479_v9 = vld [vmem:[%s1595_s14 + $0x170] sm:$0xff]  }
  0x3b   : > { %1288 = vmatpush3.bf16.msra.mxu0 %v1441_v27  ;;  %v1474_v4 = vld [vmem:[%s1595_s14 + $0x1a0] sm:$0xff]   ;;  %v1476_v6 = vld [vmem:[%s1595_s14 + $0x1e8] sm:$0xff]   ;;  %v1480_v10 = vld [vmem:[%s1595_s14 + $0x1f0] sm:$0xff]  }
  0x3c   : > { %1310 = vmatpush3.bf16.msra.mxu1 %v1442_v28  ;;  %1289 = vmatprep.subr.bf16.mxu0 %v1443_v29  ;;  %v1477_v7 = vld [vmem:[%s1595_s14 + $0x128] sm:$0xff]   ;;  %v1481_v11 = vld [vmem:[%s1595_s14 + $0x130] sm:$0xff]   ;;  %v1483_v13 = vld [vmem:[%s1595_s14 + $0x178] sm:$0xff]  }
  0x3d   : > { %1311 = vmatprep.subr.bf16.mxu1 %v1444_v30  ;;  %v1478_v8 = vld [vmem:[%s1595_s14 + $0x1a8] sm:$0xff]   ;;  %v1482_v12 = vld [vmem:[%s1595_s14 + $0x1b0] sm:$0xff]   ;;  %v1484_v14 = vld [vmem:[%s1595_s14 + $0x1f8] sm:$0xff]  }
  0x3e   : > { %v1485_v15 = vld [vmem:[%s1595_s14 + $0x138] sm:$0xff]   ;;  %v278_v17 = vld [vmem:[%s1597_s15 + $0x10] sm:$0xff]  ;;  %v279_v21 = vld [vmem:[%s1597_s15 + $0x18] sm:$0xff] }
  0x3f   : > { %1290 = vmatpush3.bf16.msra.mxu0 %v1445_v31  ;;  %v1486_v16 = vld [vmem:[%s1595_s14 + $0x1b8] sm:$0xff]   ;;  %v282_v18 = vld [vmem:[%s1597_s15 + $0x30] sm:$0xff]  ;;  %v283_v22 = vld [vmem:[%s1597_s15 + $0x38] sm:$0xff] }
  0x40   : > { %1312 = vmatpush3.bf16.msra.mxu1 %v1446_v32  ;;  %1291 = vmatprep.subr.bf16.mxu0 %v1447_v33  ;;  %v1197_v19 = vcombine.low %v278_v17, %v282_v18  ;;  %v1198_v20 = vcombine.high %v278_v17, %v282_v18  ;;  %v1199_v23 = vcombine.low %v279_v21, %v283_v22 }
  0x41   : > { %1313 = vmatprep.subr.bf16.mxu1 %v1448_v34  ;;  %v1200_v24 = vcombine.high %v279_v21, %v283_v22 }
  0x43   : > { %1292 = vmatpush3.bf16.msra.mxu0 %v1449_v35 }
  0x44   : > { %1314 = vmatpush3.bf16.msra.mxu1 %v1450_v36  ;;  %1293 = vmatprep.subr.bf16.mxu0 %v1451_v37 }
  0x45   : > { %1315 = vmatprep.subr.bf16.mxu1 %v1452_v38 }
  0x47   : > { %1294 = vmatpush3.bf16.msra.mxu0 %v1453_v39 }
  0x48   : > { %1316 = vmatpush3.bf16.msra.mxu1 %v1454_v40  ;;  %1323 = vmatprep.subr.bf16.mxu0 %v1455_v49 }
  0x49   : > { %1345 = vmatprep.subr.bf16.mxu1 %v1456_v50 }
  0x4a   : > { %869 = vmatmul.mubr.bf16.vlgmr.msra.gmra.mrb[0].mxu0 %v1193_v44 }
  0x4b   : > { %910 = vmatmul.mubr.bf16.vlgmr.msra.gmra.mrb[0].mxu1 %v1195_v47  ;;  %1324 = vmatpush3.bf16.msra.mxu0 %v1457_v51  ;;  %v274_v51 = vld [vmem:[#allocation2] sm:$0xff] }
  0x4c   : > { %1346 = vmatpush3.bf16.msra.mxu1 %v1458_v52  ;;  %1325 = vmatprep.subr.bf16.mxu0 %v1459_v53 }
  0x4d   : > { %1347 = vmatprep.subr.bf16.mxu1 %v1460_v54  ;;  %950 = vmatprep.mubr.bf16.mxu0 %v1198_v20 }
  0x4e   : > { %991 = vmatprep.mubr.bf16.mxu1 %v1200_v24 }
  0x4f   : > { %1326 = vmatpush3.bf16.msra.mxu0 %v1461_v55  ;;  %v275_v55 = vld [vmem:[#allocation2 + $0x8] sm:$0xff] }
  0x50   : > { %1348 = vmatpush3.bf16.msra.mxu1 %v1462_v56  ;;  %1327 = vmatprep.subr.bf16.mxu0 %v1463_v57 }
  0x51   : > { %1349 = vmatprep.subr.bf16.mxu1 %v1464_v58 }
  0x53   : > { %1328 = vmatpush3.bf16.msra.mxu0 %v1465_v59  ;;  %v1487_v59 = vld [vmem:[%s1722_s3] sm:$0xff] (!%p1265_p10)  }
  0x54   : > { %1350 = vmatpush3.bf16.msra.mxu1 %v1466_v60  ;;  %1329 = vmatprep.subr.bf16.mxu0 %v1467_v61  ;;  %v1520_v60 = vmov (!%p1265_p10), 0.0   ;;  %v1488_v61 = vld [vmem:[%s1722_s3 + $0x8] sm:$0xff] (!%p1265_p10)  }
  0x55   : > { %1351 = vmatprep.subr.bf16.mxu1 %v1468_v62  ;;  %v1489_v62 = vld [vmem:[%s1722_s3 + $0x10] sm:$0xff] (!%p1265_p10)  }
  0x57   : > { %1330 = vmatpush3.bf16.msra.mxu0 %v1469_v63  ;;  %v1490_v63 = vld [vmem:[%s1722_s3 + $0x18] sm:$0xff] (!%p1265_p10)  }
  0x58   : > { %1352 = vmatpush3.bf16.msra.mxu1 %v1470_v0  ;;  %1331 = vmatprep.subr.bf16.mxu0 %v1471_v1  ;;  %v1491_v0 = vld [vmem:[%s1722_s3 + $0x20] sm:$0xff] (!%p1265_p10)   ;;  %v1492_v1 = vld [vmem:[%s1722_s3 + $0x28] sm:$0xff] (!%p1265_p10)  }
  0x59   : > { %1353 = vmatprep.subr.bf16.mxu1 %v1472_v2 }
  0x5b   : > { %1332 = vmatpush3.bf16.msra.mxu0 %v1473_v3 }
  0x5c   : > { %1354 = vmatpush3.bf16.msra.mxu1 %v1474_v4  ;;  %1333 = vmatprep.subr.bf16.mxu0 %v1475_v5  ;;  %v1266_v4 = vld [vmem:[%s1721_s2] ss:$0 sm:$0xff] (!%p1265_p10) }
  0x5d   : > { %1355 = vmatprep.subr.bf16.mxu1 %v1476_v6 }
  0x5f   : > { %1334 = vmatpush3.bf16.msra.mxu0 %v1477_v7  ;;  %v1493_v7 = vld [vmem:[%s1722_s3 + $0x30] sm:$0xff] (!%p1265_p10)  }
  0x60   : > { %1356 = vmatpush3.bf16.msra.mxu1 %v1478_v8  ;;  %1335 = vmatprep.subr.bf16.mxu0 %v1479_v9 }
  0x61   : > { %1357 = vmatprep.subr.bf16.mxu1 %v1480_v10  ;;  %v1494_v10 = vld [vmem:[%s1722_s3 + $0x38] sm:$0xff] (!%p1265_p10)  }
  0x63   : > { %1336 = vmatpush3.bf16.msra.mxu0 %v1481_v11 }
  0x64   : > { %1358 = vmatpush3.bf16.msra.mxu1 %v1482_v12  ;;  %1337 = vmatprep.subr.bf16.mxu0 %v1483_v13  ;;  %v1267_v12 = vld [vmem:[%s1723_s4] ss:$0 sm:$0xff] (!%p1265_p10) }
  0x65   : > { %1359 = vmatprep.subr.bf16.mxu1 %v1484_v14 }
  0x67   : > { %1338 = vmatpush3.bf16.msra.mxu0 %v1485_v15 }
  0x68   : > { %1360 = vmatpush3.bf16.msra.mxu1 %v1486_v16  ;;  %1376 = vmatprep.subr.bf16.mxu0 (!%p1265_p10), %v1520_v60 }
  0x6a   : > { %951 = vmatmul.mubr.bf16.vlgmr.msra.gmra.mrb[4].mxu0 %v1197_v19 }
  0x6b   : > { %992 = vmatmul.mubr.bf16.vlgmr.msra.gmra.mrb[4].mxu1 %v1199_v23  ;;  %1377 = vmatpush3.bf16.msra.mxu0 (!%p1265_p10), %v1487_v59 }
  0x6c   : > { %1392 = vmatprep.mubr.msk.bf16.mxu0 (!%p1265_p10), %vm1521_vm0, %v1520_v60  ;;  %1378 = vmatprep.subr.bf16.mxu0 (!%p1265_p10), %v1520_v60 }
  0x6f   : > { %1379 = vmatpush3.bf16.msra.mxu0 (!%p1265_p10), %v1488_v61 }
  0x70   : > { %1380 = vmatprep.subr.bf16.mxu0 (!%p1265_p10), %v1520_v60 }
  0x73   : > { %1381 = vmatpush3.bf16.msra.mxu0 (!%p1265_p10), %v1489_v62 }
  0x74   : > { %1382 = vmatprep.subr.bf16.mxu0 (!%p1265_p10), %v1520_v60 }
  0x77   : > { %1383 = vmatpush3.bf16.msra.mxu0 (!%p1265_p10), %v1490_v63 }
  0x78   : > { %1384 = vmatprep.subr.bf16.mxu0 (!%p1265_p10), %v1520_v60 }
  0x7b   : > { %1385 = vmatpush3.bf16.msra.mxu0 (!%p1265_p10), %v1491_v0 }
  0x7c   : > { %1386 = vmatprep.subr.bf16.mxu0 (!%p1265_p10), %v1520_v60 }
  0x7f   : > { %1387 = vmatpush3.bf16.msra.mxu0 (!%p1265_p10), %v1492_v1 }
  0x80   : > { %1388 = vmatprep.subr.bf16.mxu0 (!%p1265_p10), %v1520_v60 }
  0x83   : > { %1389 = vmatpush3.bf16.msra.mxu0 (!%p1265_p10), %v1493_v7 }
  0x84   : > { %1390 = vmatprep.subr.bf16.mxu0 (!%p1265_p10), %v1520_v60 }
  0x87   : > { %1391 = vmatpush3.bf16.msra.mxu0 (!%p1265_p10), %v1494_v10 }
 0x11d   : > { %v1295_v25 = vpop.f32.mrb[0].mxu0 }
 0x11e   : > { %v1317_v26 = vpop.f32.mrb[0].mxu1  ;;  %v1296_v27 = vpop.f32.mrb[1].mxu0 }
 0x11f   : > { %v1297_v28 = vadd.f32 %v1296_v27, %v1295_v25  ;;  %v1318_v29 = vpop.f32.mrb[1].mxu1  ;;  %v1298_v30 = vpop.f32.mrb[2].mxu0 }
 0x120   : > { %v1319_v31 = vadd.f32 %v1318_v29, %v1317_v26  ;;  %v1320_v32 = vpop.f32.mrb[2].mxu1  ;;  %v1299_v33 = vpop.f32.mrb[3].mxu0 }
 0x121   : > { %v1300_v34 = vadd.f32 %v1299_v33, %v1298_v30  ;;  %v1321_v35 = vpop.f32.mrb[3].mxu1 }
 0x122   : > { %v912_v36 = vadd.f32 %v1319_v31, %v1297_v28  ;;  %v1322_v37 = vadd.f32 %v1321_v35, %v1320_v32 }
 0x124   : > { %v915_v38 = vadd.f32 %v1322_v37, %v1300_v34 }
 0x13d   : > { %v1339_v39 = vpop.f32.mrb[4].mxu0 }
 0x13e   : > { %v1361_v40 = vpop.f32.mrb[4].mxu1  ;;  %v1340_v41 = vpop.f32.mrb[5].mxu0 }
 0x13f   : > { %v1341_v42 = vadd.f32 %v1340_v41, %v1339_v39  ;;  %v1362_v43 = vpop.f32.mrb[5].mxu1  ;;  %v1342_v44 = vpop.f32.mrb[6].mxu0 }
 0x140   : > { %v1363_v45 = vadd.f32 %v1362_v43, %v1361_v40  ;;  %v1364_v46 = vpop.f32.mrb[6].mxu1  ;;  %v1343_v47 = vpop.f32.mrb[7].mxu0 }
 0x141   : > { %v953_v48 = vadd.f32 %v1341_v42, %v912_v36  ;;  %v1344_v49 = vadd.f32 %v1343_v47, %v1342_v44  ;;  %v1365_v50 = vpop.f32.mrb[7].mxu1 }
 0x142   : > { %v1366_v52 = vadd.f32 %v1365_v50, %v1364_v46 }
 0x143   : > { %v994_v53 = vadd.f32 %v1363_v45, %v953_v48  ;;  %v956_v54 = vadd.f32 %v1344_v49, %v915_v38  ;;  %1007 = sbr.rel (%p1265_p10) target bundleno = 560 (0x230), region = 71 }
 0x145   : > { %v1000_v56 = vadd.f32 %v994_v53, %v274_v51  ;;  %v997_v57 = vadd.f32 %v1366_v52, %v956_v54 }
 0x147   : > { %1002 = vst [vmem:[#allocation2] sm:$0xff] %v1000_v56  ;;  %v1001_v58 = vadd.f32 %v997_v57, %v275_v55 }
 0x149   : > { %1003 = vst [vmem:[#allocation2 + $0x8] sm:$0xff] %v1001_v58 }
 0x14e   : > { %v1008_v2 = vld [vmem:[#allocation2] sm:$0xff] }
 0x14f   : > { %v1017_v5 = vadd.f32 %v1266_v4, %v1008_v2 }
 0x150   : > { %v1009_v3 = vld [vmem:[#allocation2 + $0x8] sm:$0xff] }
 0x151   : > { %v1018_v6 = vadd.f32 %v1266_v4, %v1009_v3  ;;  %v1019_v8 = vmax.f32 %v1017_v5, 0.0 }
 0x153   : > { %v1020_v9 = vmax.f32 %v1018_v6, 0.0 }
 0x155   : > { %v1021_v11 = vpack.c.bf16 %v1020_v9, %v1019_v8 }
 0x157   : > { %1393 = vmatmul.mubr.bf16.vlgmr.msra.gmra.mrb[0].mxu0 %v1021_v11 }
 0x22a   : > { %v1127_v13 = vpop.f32.mrb[0].mxu0 }
 0x22b   : > { %v1128_v14 = vadd.f32 %v1267_v12, %v1127_v13  ;;  %v1394_v15 = vpop.f32.mrb[1].mxu0 }
 0x22c   : > { %v1130_v16 = vpop.f32.mrb[2].mxu0 }
 0x22d   : > { %1134 = vst [vmem:[%s1724_s5] sm:$0xff] %v1128_v14  ;;  %v1131_v17 = vadd.f32 %v1267_v12, %v1130_v16  ;;  %v1395_v18 = vpop.f32.mrb[3].mxu0 }
 0x22f   : > { %1135 = vst [vmem:[%s1724_s5 + $0x8] sm:$0xff] %v1131_v17 }
 0x230 PF: > { %p12_p11 = scmp.ge.s32.totalorder %s1571_s22, 13   ;;  %s1725_s18 = smov %s1513_s19 }
 0x231   : > { %s1726_s19 = smov %s1580_s25  ;;  %s1727_s20 = smov %s1571_s22 }
 0x232   :  { %14 = sbr.rel (!%p12_p11) target bundleno = 2 (0x2), region = 105 }

</bundles_post_ra>
